<compile_context>
chip_gen: v7x
topology: tpu7x:2x2x1
jax: 0.10.0
libtpu: 0.0.40
codegen_flags: <defaults>
</compile_context>

<pallas_src>
import jax
import jax.numpy as jnp
from jax.experimental import pallas as pl
from jax.experimental.pallas import tpu as pltpu


# ----------------------------- Pallas kernels ------------------------------

def _conv_kernel(w_ref, p_ref, b_ref, o_ref):
    # w: (Cout, K), p: (K, tm) im2col columns, b: (Cout, 1)
    acc = jnp.dot(w_ref[...], p_ref[...], preferred_element_type=jnp.float32)
    o_ref[...] = jnp.maximum(acc + b_ref[...], 0.0)          # Conv2d + bias + ReLU


def conv_bias_relu_T(wmat, b, pT):
    """out (Cout, M) = wmat (Cout, K) @ pT (K, M) + b, then ReLU.

    M = N*Ho*Wo is the lane axis (lane-dense stores).  For large M the grid is
    a 2-way 'parallel' split over M so both TensorCores are used on v7x; small
    layers run as a single grid step (everything fits VMEM trivially).
    """
    Cout, K = wmat.shape
    K2, M = pT.shape
    assert K == K2
    gm = 2 if (M >= 512 and M % 256 == 0) else 1
    tm = M // gm
    return pl.pallas_call(
        _conv_kernel,
        out_shape=jax.ShapeDtypeStruct((Cout, M), jnp.float32),
        grid=(gm,),
        in_specs=[
            pl.BlockSpec((Cout, K), lambda i: (0, 0)),
            pl.BlockSpec((K, tm), lambda i: (0, i)),
            pl.BlockSpec((Cout, 1), lambda i: (0, 0)),
        ],
        out_specs=pl.BlockSpec((Cout, tm), lambda i: (0, i)),
        compiler_params=pltpu.CompilerParams(
            dimension_semantics=("parallel",)),
    )(wmat, pT, b.reshape(Cout, 1))


def _mlp_kernel(x_ref, w1_ref, b1_ref, w2_ref, b2_ref, w3_ref, b3_ref, o_ref):
    h = jnp.dot(x_ref[...], w1_ref[...],
                preferred_element_type=jnp.float32) + b1_ref[...]
    h = jnp.where(h > 0, h, 0.2 * h)            # LeakyReLU(0.2)
    h = jnp.dot(h, w2_ref[...],
                preferred_element_type=jnp.float32) + b2_ref[...]
    h = jnp.where(h > 0, h, 0.2 * h)            # LeakyReLU(0.2)
    h = jnp.dot(h, w3_ref[...],
                preferred_element_type=jnp.float32) + b3_ref[...]
    o_ref[...] = 1.0 / (1.0 + jnp.exp(-h))      # Sigmoid


def mlp_head(x, lin_params):
    (w1, b1), (w2, b2), (w3, b3) = lin_params
    N = x.shape[0]
    vmem = pl.BlockSpec(memory_space=pltpu.MemorySpace.VMEM)
    return pl.pallas_call(
        _mlp_kernel,
        out_shape=jax.ShapeDtypeStruct((N, 1), jnp.float32),
        in_specs=[vmem] * 7,
        out_specs=vmem,
    )(x, w1, b1.reshape(1, -1), w2, b2.reshape(1, -1), w3, b3.reshape(1, -1))


# ------------------------------ JAX glue ----------------------------------

def im2col_T(act, k=3, stride=2, pad=1):
    """(C, N, H, W) -> transposed patches (C*k*k, N*Ho*Wo); K ordered (c, kh, kw).

    Pure pad + strided-slice + stack + reshape: no transposes, and the output
    column order (n, ho, wo) is exactly the conv kernel's lane order.
    """
    C, N, H, W = act.shape
    ap = jnp.pad(act, ((0, 0), (0, 0), (pad, pad), (pad, pad)))
    Ho = (H + 2 * pad - k) // stride + 1
    Wo = (W + 2 * pad - k) // stride + 1
    cols = []
    for kh in range(k):
        for kw in range(k):
            cols.append(ap[:, :, kh:kh + stride * Ho:stride,
                               kw:kw + stride * Wo:stride])
    pT = jnp.stack(cols, axis=1)                # (C, k*k, N, Ho, Wo)
    return pT.reshape(C * k * k, N * Ho * Wo), Ho, Wo


def init_params(key):
    conv_shapes = [(8, 1), (8, 8), (16, 8), (32, 16), (32, 32)]   # (Cout, Cin)
    lin_shapes = [(512, 64), (64, 16), (16, 1)]                   # (in, out)
    params = {"conv": [], "lin": []}
    for (cout, cin) in conv_shapes:
        key, k1, k2 = jax.random.split(key, 3)
        w = jax.random.normal(k1, (cout, cin, 3, 3), jnp.float32) / jnp.sqrt(cin * 9.0)
        b = 0.01 * jax.random.normal(k2, (cout,), jnp.float32)
        params["conv"].append((w, b))
    for (din, dout) in lin_shapes:
        key, k1, k2 = jax.random.split(key, 3)
        w = jax.random.normal(k1, (din, dout), jnp.float32) / jnp.sqrt(float(din))
        b = 0.01 * jax.random.normal(k2, (dout,), jnp.float32)
        params["lin"].append((w, b))
    return params


@jax.jit
def discriminator_forward(x, params):
    N = x.shape[0]
    # (N, 1, H, W) -> channel-leading (C, N, H, W); the convs keep this layout
    # so each (Cout, M) output reshapes directly into the next im2col.
    act = x.reshape(1, N, x.shape[2], x.shape[3])
    # TODO(synk): fusing all 5 convs + MLP into one VMEM-resident kernel would
    # need in-kernel stride-2 lane gathers for the im2col; the (cheap, fused)
    # patch build stays in XLA so Mosaic lowering remains robust.
    for (w, b) in params["conv"]:
        cout, cin = w.shape[0], w.shape[1]
        pT, Ho, Wo = im2col_T(act)                               # (Cin*9, M)
        out = conv_bias_relu_T(w.reshape(cout, cin * 9), b, pT)  # (Cout, M)
        act = out.reshape(cout, N, Ho, Wo)                       # (C, N, H, W)
    # PyTorch .view(-1, sz) flattens (C, H, W) per sample — one tiny permute.
    flat = act.transpose(1, 0, 2, 3).reshape(N, -1)              # (N, 512)
    return mlp_head(flat, params["lin"])                         # (N, 1)


@jax.jit
def reference_forward(x, params):
    for (w, b) in params["conv"]:
        x = jax.lax.conv_general_dilated(
            x, w, window_strides=(2, 2), padding=((1, 1), (1, 1)),
            dimension_numbers=("NCHW", "OIHW", "NCHW"))
        x = jnp.maximum(x + b[None, :, None, None], 0.0)
    h = x.reshape(x.shape[0], -1)
    for i, (w, b) in enumerate(params["lin"]):
        h = h @ w + b
        if i < 2:
            h = jnp.where(h > 0, h, 0.2 * h)
    return jax.nn.sigmoid(h)


if __name__ == "__main__":
    key = jax.random.PRNGKey(0)
    kp, kx = jax.random.split(key)
    params = init_params(kp)
    # (N, 1, 128, 128): five stride-2 convs -> 4x4 spatial, so flatten = 32*4*4.
    x = jax.random.normal(kx, (2, 1, 128, 128), jnp.float32)

    y = discriminator_forward(x, params)
    y = jax.block_until_ready(y)
    assert y.shape == (2, 1)

    y_ref = jax.block_until_ready(reference_forward(x, params))
    assert jnp.allclose(y, y_ref, rtol=1e-4, atol=1e-5), "mismatch vs reference"

    print("KERNEL_OK")
</pallas_src>

<mosaic_0001>
module attributes {stable_mosaic.version = 11 : i64} {
  func.func @_conv_kernel(%arg0: i32, %arg1: memref<8x9xf32, #tpu.memory_space<vmem>>, %arg2: memref<9x4096xf32, #tpu.memory_space<vmem>>, %arg3: memref<8x1xf32, #tpu.memory_space<vmem>>, %arg4: memref<8x4096xf32, #tpu.memory_space<vmem>>) attributes {dimension_semantics = [#tpu.dimension_semantics<parallel>], iteration_bounds = array<i64: 2>, scalar_prefetch = 0 : i64, scratch_operands = 0 : i64, tpu.core_type = #tpu.core_type<tc>, window_params = [{pipeline_mode = #tpu.pipeline_mode<synchronous>, transform_indices = @transform_0, window_bounds = array<i64: 8, 9>}, {transform_indices = @transform_1, window_bounds = array<i64: 9, 4096>}, {pipeline_mode = #tpu.pipeline_mode<synchronous>, transform_indices = @transform_2, window_bounds = array<i64: 8, 1>}, {transform_indices = @transform_3, window_bounds = array<i64: 8, 4096>}]} {
    %c0 = arith.constant 0 : index
    %c0_0 = arith.constant 0 : index
    %0 = vector.load %arg1[%c0, %c0_0] : memref<8x9xf32, #tpu.memory_space<vmem>>, vector<8x9xf32>
    %c0_1 = arith.constant 0 : index
    %c0_2 = arith.constant 0 : index
    %1 = vector.load %arg2[%c0_1, %c0_2] : memref<9x4096xf32, #tpu.memory_space<vmem>>, vector<9x4096xf32>
    %cst = arith.constant dense<0.000000e+00> : vector<8x4096xf32>
    %2 = tpu.matmul %0, %1, %cst {dimension_numbers = #tpu.dot_dimension_numbers<[1], [0], [0], [1], [0, 0, 1, 1], [], []>} : vector<8x9xf32>, vector<9x4096xf32>, vector<8x4096xf32> -> vector<8x4096xf32>
    %c0_3 = arith.constant 0 : index
    %c0_4 = arith.constant 0 : index
    %3 = vector.load %arg3[%c0_3, %c0_4] : memref<8x1xf32, #tpu.memory_space<vmem>>, vector<8x1xf32>
    %4 = vector.broadcast %3 : vector<8x1xf32> to vector<8x4096xf32>
    %5 = arith.addf %2, %4 : vector<8x4096xf32>
    %cst_5 = arith.constant 0.000000e+00 : f32
    %6 = vector.broadcast %cst_5 : f32 to vector<8x4096xf32>
    %7 = arith.maximumf %5, %6 : vector<8x4096xf32>
    %c0_6 = arith.constant 0 : index
    %c0_7 = arith.constant 0 : index
    %8 = vector.load %arg4[%c0_6, %c0_7] : memref<8x4096xf32, #tpu.memory_space<vmem>>, vector<8x4096xf32>
    tpu.vector_store %arg4[%c0_6, %c0_7], %7 {strides = array<i32>} : memref<8x4096xf32, #tpu.memory_space<vmem>>, vector<8x4096xf32>,
    return
  }
  func.func @transform_0(%arg0: i32) -> (i32, i32) {
    %c0_i32 = arith.constant 0 : i32
    %c0_i32_0 = arith.constant 0 : i32
    %c0_i32_1 = arith.constant 0 : i32
    return %c0_i32, %c0_i32_0 : i32, i32
  }
  func.func @transform_1(%arg0: i32) -> (i32, i32) {
    %c0_i32 = arith.constant 0 : i32
    %c0_i32_0 = arith.constant 0 : i32
    return %c0_i32, %arg0 : i32, i32
  }
  func.func @transform_2(%arg0: i32) -> (i32, i32) {
    %c0_i32 = arith.constant 0 : i32
    %c0_i32_0 = arith.constant 0 : i32
    %c0_i32_1 = arith.constant 0 : i32
    return %c0_i32, %c0_i32_0 : i32, i32
  }
  func.func @transform_3(%arg0: i32) -> (i32, i32) {
    %c0_i32 = arith.constant 0 : i32
    %c0_i32_0 = arith.constant 0 : i32
    return %c0_i32, %arg0 : i32, i32
  }
}

module attributes {stable_mosaic.version = 11 : i64} {
  func.func @_conv_kernel(%arg0: i32, %arg1: memref<8x72xf32, #tpu.memory_space<vmem>>, %arg2: memref<72x1024xf32, #tpu.memory_space<vmem>>, %arg3: memref<8x1xf32, #tpu.memory_space<vmem>>, %arg4: memref<8x1024xf32, #tpu.memory_space<vmem>>) attributes {dimension_semantics = [#tpu.dimension_semantics<parallel>], iteration_bounds = array<i64: 2>, scalar_prefetch = 0 : i64, scratch_operands = 0 : i64, tpu.core_type = #tpu.core_type<tc>, window_params = [{pipeline_mode = #tpu.pipeline_mode<synchronous>, transform_indices = @transform_0, window_bounds = array<i64: 8, 72>}, {transform_indices = @transform_1, window_bounds = array<i64: 72, 1024>}, {pipeline_mode = #tpu.pipeline_mode<synchronous>, transform_indices = @transform_2, window_bounds = array<i64: 8, 1>}, {transform_indices = @transform_3, window_bounds = array<i64: 8, 1024>}]} {
    %c0 = arith.constant 0 : index
    %c0_0 = arith.constant 0 : index
    %0 = vector.load %arg1[%c0, %c0_0] : memref<8x72xf32, #tpu.memory_space<vmem>>, vector<8x72xf32>
    %c0_1 = arith.constant 0 : index
    %c0_2 = arith.constant 0 : index
    %1 = vector.load %arg2[%c0_1, %c0_2] : memref<72x1024xf32, #tpu.memory_space<vmem>>, vector<72x1024xf32>
    %cst = arith.constant dense<0.000000e+00> : vector<8x1024xf32>
    %2 = tpu.matmul %0, %1, %cst {dimension_numbers = #tpu.dot_dimension_numbers<[1], [0], [0], [1], [0, 0, 1, 1], [], []>} : vector<8x72xf32>, vector<72x1024xf32>, vector<8x1024xf32> -> vector<8x1024xf32>
    %c0_3 = arith.constant 0 : index
    %c0_4 = arith.constant 0 : index
    %3 = vector.load %arg3[%c0_3, %c0_4] : memref<8x1xf32, #tpu.memory_space<vmem>>, vector<8x1xf32>
    %4 = vector.broadcast %3 : vector<8x1xf32> to vector<8x1024xf32>
    %5 = arith.addf %2, %4 : vector<8x1024xf32>
    %cst_5 = arith.constant 0.000000e+00 : f32
    %6 = vector.broadcast %cst_5 : f32 to vector<8x1024xf32>
    %7 = arith.maximumf %5, %6 : vector<8x1024xf32>
    %c0_6 = arith.constant 0 : index
    %c0_7 = arith.constant 0 : index
    %8 = vector.load %arg4[%c0_6, %c0_7] : memref<8x1024xf32, #tpu.memory_space<vmem>>, vector<8x1024xf32>
    tpu.vector_store %arg4[%c0_6, %c0_7], %7 {strides = array<i32>} : memref<8x1024xf32, #tpu.memory_space<vmem>>, vector<8x1024xf32>,
    return
  }
  func.func @transform_0(%arg0: i32) -> (i32, i32) {
    %c0_i32 = arith.constant 0 : i32
    %c0_i32_0 = arith.constant 0 : i32
    %c0_i32_1 = arith.constant 0 : i32
    return %c0_i32, %c0_i32_0 : i32, i32
  }
  func.func @transform_1(%arg0: i32) -> (i32, i32) {
    %c0_i32 = arith.constant 0 : i32
    %c0_i32_0 = arith.constant 0 : i32
    return %c0_i32, %arg0 : i32, i32
  }
  func.func @transform_2(%arg0: i32) -> (i32, i32) {
    %c0_i32 = arith.constant 0 : i32
    %c0_i32_0 = arith.constant 0 : i32
    %c0_i32_1 = arith.constant 0 : i32
    return %c0_i32, %c0_i32_0 : i32, i32
  }
  func.func @transform_3(%arg0: i32) -> (i32, i32) {
    %c0_i32 = arith.constant 0 : i32
    %c0_i32_0 = arith.constant 0 : i32
    return %c0_i32, %arg0 : i32, i32
  }
}

module attributes {stable_mosaic.version = 11 : i64} {
  func.func @_conv_kernel(%arg0: i32, %arg1: memref<16x72xf32, #tpu.memory_space<vmem>>, %arg2: memref<72x256xf32, #tpu.memory_space<vmem>>, %arg3: memref<16x1xf32, #tpu.memory_space<vmem>>, %arg4: memref<16x256xf32, #tpu.memory_space<vmem>>) attributes {dimension_semantics = [#tpu.dimension_semantics<parallel>], iteration_bounds = array<i64: 2>, scalar_prefetch = 0 : i64, scratch_operands = 0 : i64, tpu.core_type = #tpu.core_type<tc>, window_params = [{pipeline_mode = #tpu.pipeline_mode<synchronous>, transform_indices = @transform_0, window_bounds = array<i64: 16, 72>}, {transform_indices = @transform_1, window_bounds = array<i64: 72, 256>}, {pipeline_mode = #tpu.pipeline_mode<synchronous>, transform_indices = @transform_2, window_bounds = array<i64: 16, 1>}, {transform_indices = @transform_3, window_bounds = array<i64: 16, 256>}]} {
    %c0 = arith.constant 0 : index
    %c0_0 = arith.constant 0 : index
    %0 = vector.load %arg1[%c0, %c0_0] : memref<16x72xf32, #tpu.memory_space<vmem>>, vector<16x72xf32>
    %c0_1 = arith.constant 0 : index
    %c0_2 = arith.constant 0 : index
    %1 = vector.load %arg2[%c0_1, %c0_2] : memref<72x256xf32, #tpu.memory_space<vmem>>, vector<72x256xf32>
    %cst = arith.constant dense<0.000000e+00> : vector<16x256xf32>
    %2 = tpu.matmul %0, %1, %cst {dimension_numbers = #tpu.dot_dimension_numbers<[1], [0], [0], [1], [0, 0, 1, 1], [], []>} : vector<16x72xf32>, vector<72x256xf32>, vector<16x256xf32> -> vector<16x256xf32>
    %c0_3 = arith.constant 0 : index
    %c0_4 = arith.constant 0 : index
    %3 = vector.load %arg3[%c0_3, %c0_4] : memref<16x1xf32, #tpu.memory_space<vmem>>, vector<16x1xf32>
    %4 = vector.broadcast %3 : vector<16x1xf32> to vector<16x256xf32>
    %5 = arith.addf %2, %4 : vector<16x256xf32>
    %cst_5 = arith.constant 0.000000e+00 : f32
    %6 = vector.broadcast %cst_5 : f32 to vector<16x256xf32>
    %7 = arith.maximumf %5, %6 : vector<16x256xf32>
    %c0_6 = arith.constant 0 : index
    %c0_7 = arith.constant 0 : index
    %8 = vector.load %arg4[%c0_6, %c0_7] : memref<16x256xf32, #tpu.memory_space<vmem>>, vector<16x256xf32>
    tpu.vector_store %arg4[%c0_6, %c0_7], %7 {strides = array<i32>} : memref<16x256xf32, #tpu.memory_space<vmem>>, vector<16x256xf32>,
    return
  }
  func.func @transform_0(%arg0: i32) -> (i32, i32) {
    %c0_i32 = arith.constant 0 : i32
    %c0_i32_0 = arith.constant 0 : i32
    %c0_i32_1 = arith.constant 0 : i32
    return %c0_i32, %c0_i32_0 : i32, i32
  }
  func.func @transform_1(%arg0: i32) -> (i32, i32) {
    %c0_i32 = arith.constant 0 : i32
    %c0_i32_0 = arith.constant 0 : i32
    return %c0_i32, %arg0 : i32, i32
  }
  func.func @transform_2(%arg0: i32) -> (i32, i32) {
    %c0_i32 = arith.constant 0 : i32
    %c0_i32_0 = arith.constant 0 : i32
    %c0_i32_1 = arith.constant 0 : i32
    return %c0_i32, %c0_i32_0 : i32, i32
  }
  func.func @transform_3(%arg0: i32) -> (i32, i32) {
    %c0_i32 = arith.constant 0 : i32
    %c0_i32_0 = arith.constant 0 : i32
    return %c0_i32, %arg0 : i32, i32
  }
}

module attributes {stable_mosaic.version = 11 : i64} {
  func.func @_conv_kernel(%arg0: i32, %arg1: memref<32x144xf32, #tpu.memory_space<vmem>>, %arg2: memref<144x128xf32, #tpu.memory_space<vmem>>, %arg3: memref<32x1xf32, #tpu.memory_space<vmem>>, %arg4: memref<32x128xf32, #tpu.memory_space<vmem>>) attributes {dimension_semantics = [#tpu.dimension_semantics<parallel>], iteration_bounds = array<i64: 1>, scalar_prefetch = 0 : i64, scratch_operands = 0 : i64, tpu.core_type = #tpu.core_type<tc>, window_params = [{pipeline_mode = #tpu.pipeline_mode<synchronous>, transform_indices = @transform_0, window_bounds = array<i64: 32, 144>}, {transform_indices = @transform_1, window_bounds = array<i64: 144, 128>}, {pipeline_mode = #tpu.pipeline_mode<synchronous>, transform_indices = @transform_2, window_bounds = array<i64: 32, 1>}, {transform_indices = @transform_3, window_bounds = array<i64: 32, 128>}]} {
    %c0 = arith.constant 0 : index
    %c0_0 = arith.constant 0 : index
    %0 = vector.load %arg1[%c0, %c0_0] : memref<32x144xf32, #tpu.memory_space<vmem>>, vector<32x144xf32>
    %c0_1 = arith.constant 0 : index
    %c0_2 = arith.constant 0 : index
    %1 = vector.load %arg2[%c0_1, %c0_2] : memref<144x128xf32, #tpu.memory_space<vmem>>, vector<144x128xf32>
    %cst = arith.constant dense<0.000000e+00> : vector<32x128xf32>
    %2 = tpu.matmul %0, %1, %cst {dimension_numbers = #tpu.dot_dimension_numbers<[1], [0], [0], [1], [0, 0, 1, 1], [], []>} : vector<32x144xf32>, vector<144x128xf32>, vector<32x128xf32> -> vector<32x128xf32>
    %c0_3 = arith.constant 0 : index
    %c0_4 = arith.constant 0 : index
    %3 = vector.load %arg3[%c0_3, %c0_4] : memref<32x1xf32, #tpu.memory_space<vmem>>, vector<32x1xf32>
    %4 = vector.broadcast %3 : vector<32x1xf32> to vector<32x128xf32>
    %5 = arith.addf %2, %4 : vector<32x128xf32>
    %cst_5 = arith.constant 0.000000e+00 : f32
    %6 = vector.broadcast %cst_5 : f32 to vector<32x128xf32>
    %7 = arith.maximumf %5, %6 : vector<32x128xf32>
    %c0_6 = arith.constant 0 : index
    %c0_7 = arith.constant 0 : index
    %8 = vector.load %arg4[%c0_6, %c0_7] : memref<32x128xf32, #tpu.memory_space<vmem>>, vector<32x128xf32>
    tpu.vector_store %arg4[%c0_6, %c0_7], %7 {strides = array<i32>} : memref<32x128xf32, #tpu.memory_space<vmem>>, vector<32x128xf32>,
    return
  }
  func.func @transform_0(%arg0: i32) -> (i32, i32) {
    %c0_i32 = arith.constant 0 : i32
    %c0_i32_0 = arith.constant 0 : i32
    %c0_i32_1 = arith.constant 0 : i32
    return %c0_i32, %c0_i32_0 : i32, i32
  }
  func.func @transform_1(%arg0: i32) -> (i32, i32) {
    %c0_i32 = arith.constant 0 : i32
    %c0_i32_0 = arith.constant 0 : i32
    return %c0_i32, %arg0 : i32, i32
  }
  func.func @transform_2(%arg0: i32) -> (i32, i32) {
    %c0_i32 = arith.constant 0 : i32
    %c0_i32_0 = arith.constant 0 : i32
    %c0_i32_1 = arith.constant 0 : i32
    return %c0_i32, %c0_i32_0 : i32, i32
  }
  func.func @transform_3(%arg0: i32) -> (i32, i32) {
    %c0_i32 = arith.constant 0 : i32
    %c0_i32_0 = arith.constant 0 : i32
    return %c0_i32, %arg0 : i32, i32
  }
}

module attributes {stable_mosaic.version = 11 : i64} {
  func.func @_conv_kernel(%arg0: i32, %arg1: memref<32x288xf32, #tpu.memory_space<vmem>>, %arg2: memref<288x32xf32, #tpu.memory_space<vmem>>, %arg3: memref<32x1xf32, #tpu.memory_space<vmem>>, %arg4: memref<32x32xf32, #tpu.memory_space<vmem>>) attributes {dimension_semantics = [#tpu.dimension_semantics<parallel>], iteration_bounds = array<i64: 1>, scalar_prefetch = 0 : i64, scratch_operands = 0 : i64, tpu.core_type = #tpu.core_type<tc>, window_params = [{pipeline_mode = #tpu.pipeline_mode<synchronous>, transform_indices = @transform_0, window_bounds = array<i64: 32, 288>}, {transform_indices = @transform_1, window_bounds = array<i64: 288, 32>}, {pipeline_mode = #tpu.pipeline_mode<synchronous>, transform_indices = @transform_2, window_bounds = array<i64: 32, 1>}, {transform_indices = @transform_3, window_bounds = array<i64: 32, 32>}]} {
    %c0 = arith.constant 0 : index
    %c0_0 = arith.constant 0 : index
    %0 = vector.load %arg1[%c0, %c0_0] : memref<32x288xf32, #tpu.memory_space<vmem>>, vector<32x288xf32>
    %c0_1 = arith.constant 0 : index
    %c0_2 = arith.constant 0 : index
    %1 = vector.load %arg2[%c0_1, %c0_2] : memref<288x32xf32, #tpu.memory_space<vmem>>, vector<288x32xf32>
    %cst = arith.constant dense<0.000000e+00> : vector<32x32xf32>
    %2 = tpu.matmul %0, %1, %cst {dimension_numbers = #tpu.dot_dimension_numbers<[1], [0], [0], [1], [0, 0, 1, 1], [], []>} : vector<32x288xf32>, vector<288x32xf32>, vector<32x32xf32> -> vector<32x32xf32>
    %c0_3 = arith.constant 0 : index
    %c0_4 = arith.constant 0 : index
    %3 = vector.load %arg3[%c0_3, %c0_4] : memref<32x1xf32, #tpu.memory_space<vmem>>, vector<32x1xf32>
    %4 = vector.broadcast %3 : vector<32x1xf32> to vector<32x32xf32>
    %5 = arith.addf %2, %4 : vector<32x32xf32>
    %cst_5 = arith.constant 0.000000e+00 : f32
    %6 = vector.broadcast %cst_5 : f32 to vector<32x32xf32>
    %7 = arith.maximumf %5, %6 : vector<32x32xf32>
    %c0_6 = arith.constant 0 : index
    %c0_7 = arith.constant 0 : index
    %8 = vector.load %arg4[%c0_6, %c0_7] : memref<32x32xf32, #tpu.memory_space<vmem>>, vector<32x32xf32>
    tpu.vector_store %arg4[%c0_6, %c0_7], %7 {strides = array<i32>} : memref<32x32xf32, #tpu.memory_space<vmem>>, vector<32x32xf32>,
    return
  }
  func.func @transform_0(%arg0: i32) -> (i32, i32) {
    %c0_i32 = arith.constant 0 : i32
    %c0_i32_0 = arith.constant 0 : i32
    %c0_i32_1 = arith.constant 0 : i32
    return %c0_i32, %c0_i32_0 : i32, i32
  }
  func.func @transform_1(%arg0: i32) -> (i32, i32) {
    %c0_i32 = arith.constant 0 : i32
    %c0_i32_0 = arith.constant 0 : i32
    return %c0_i32, %arg0 : i32, i32
  }
  func.func @transform_2(%arg0: i32) -> (i32, i32) {
    %c0_i32 = arith.constant 0 : i32
    %c0_i32_0 = arith.constant 0 : i32
    %c0_i32_1 = arith.constant 0 : i32
    return %c0_i32, %c0_i32_0 : i32, i32
  }
  func.func @transform_3(%arg0: i32) -> (i32, i32) {
    %c0_i32 = arith.constant 0 : i32
    %c0_i32_0 = arith.constant 0 : i32
    return %c0_i32, %arg0 : i32, i32
  }
}

module attributes {stable_mosaic.version = 11 : i64} {
  func.func @_mlp_kernel(%arg0: memref<2x512xf32, #tpu.memory_space<vmem>>, %arg1: memref<512x64xf32, #tpu.memory_space<vmem>>, %arg2: memref<1x64xf32, #tpu.memory_space<vmem>>, %arg3: memref<64x16xf32, #tpu.memory_space<vmem>>, %arg4: memref<1x16xf32, #tpu.memory_space<vmem>>, %arg5: memref<16x1xf32, #tpu.memory_space<vmem>>, %arg6: memref<1x1xf32, #tpu.memory_space<vmem>>, %arg7: memref<2x1xf32, #tpu.memory_space<vmem>>) attributes {dimension_semantics = [], scalar_prefetch = 0 : i64, scratch_operands = 0 : i64, tpu.core_type = #tpu.core_type<tc>} {
    %c0 = arith.constant 0 : index
    %c0_0 = arith.constant 0 : index
    %0 = vector.load %arg0[%c0, %c0_0] : memref<2x512xf32, #tpu.memory_space<vmem>>, vector<2x512xf32>
    %c0_1 = arith.constant 0 : index
    %c0_2 = arith.constant 0 : index
    %1 = vector.load %arg1[%c0_1, %c0_2] : memref<512x64xf32, #tpu.memory_space<vmem>>, vector<512x64xf32>
    %cst = arith.constant dense<0.000000e+00> : vector<2x64xf32>
    %2 = tpu.matmul %0, %1, %cst {dimension_numbers = #tpu.dot_dimension_numbers<[1], [0], [0], [1], [0, 0, 1, 1], [], []>} : vector<2x512xf32>, vector<512x64xf32>, vector<2x64xf32> -> vector<2x64xf32>
    %c0_3 = arith.constant 0 : index
    %c0_4 = arith.constant 0 : index
    %3 = vector.load %arg2[%c0_3, %c0_4] : memref<1x64xf32, #tpu.memory_space<vmem>>, vector<1x64xf32>
    %4 = vector.broadcast %3 : vector<1x64xf32> to vector<2x64xf32>
    %5 = arith.addf %2, %4 : vector<2x64xf32>
    %cst_5 = arith.constant 0.000000e+00 : f32
    %6 = vector.broadcast %cst_5 : f32 to vector<2x64xf32>
    %7 = arith.cmpf ogt, %5, %6 : vector<2x64xf32>
    %cst_6 = arith.constant 2.000000e-01 : f32
    %8 = vector.broadcast %cst_6 : f32 to vector<2x64xf32>
    %9 = arith.mulf %8, %5 : vector<2x64xf32>
    %10 = arith.select %7, %5, %9 : vector<2x64xi1>, vector<2x64xf32>
    %c0_7 = arith.constant 0 : index
    %c0_8 = arith.constant 0 : index
    %11 = vector.load %arg3[%c0_7, %c0_8] : memref<64x16xf32, #tpu.memory_space<vmem>>, vector<64x16xf32>
    %cst_9 = arith.constant dense<0.000000e+00> : vector<2x16xf32>
    %12 = tpu.matmul %10, %11, %cst_9 {dimension_numbers = #tpu.dot_dimension_numbers<[1], [0], [0], [1], [0, 0, 1, 1], [], []>} : vector<2x64xf32>, vector<64x16xf32>, vector<2x16xf32> -> vector<2x16xf32>
    %c0_10 = arith.constant 0 : index
    %c0_11 = arith.constant 0 : index
    %13 = vector.load %arg4[%c0_10, %c0_11] : memref<1x16xf32, #tpu.memory_space<vmem>>, vector<1x16xf32>
    %14 = vector.broadcast %13 : vector<1x16xf32> to vector<2x16xf32>
    %15 = arith.addf %12, %14 : vector<2x16xf32>
    %cst_12 = arith.constant 0.000000e+00 : f32
    %16 = vector.broadcast %cst_12 : f32 to vector<2x16xf32>
    %17 = arith.cmpf ogt, %15, %16 : vector<2x16xf32>
    %cst_13 = arith.constant 2.000000e-01 : f32
    %18 = vector.broadcast %cst_13 : f32 to vector<2x16xf32>
    %19 = arith.mulf %18, %15 : vector<2x16xf32>
    %20 = arith.select %17, %15, %19 : vector<2x16xi1>, vector<2x16xf32>
    %c0_14 = arith.constant 0 : index
    %c0_15 = arith.constant 0 : index
    %21 = vector.load %arg5[%c0_14, %c0_15] : memref<16x1xf32, #tpu.memory_space<vmem>>, vector<16x1xf32>
    %cst_16 = arith.constant dense<0.000000e+00> : vector<2x1xf32>
    %22 = tpu.matmul %20, %21, %cst_16 {dimension_numbers = #tpu.dot_dimension_numbers<[1], [0], [0], [1], [0, 0, 1, 1], [], []>} : vector<2x16xf32>, vector<16x1xf32>, vector<2x1xf32> -> vector<2x1xf32>
    %c0_17 = arith.constant 0 : index
    %c0_18 = arith.constant 0 : index
    %23 = vector.load %arg6[%c0_17, %c0_18] : memref<1x1xf32, #tpu.memory_space<vmem>>, vector<1x1xf32>
    %24 = vector.broadcast %23 : vector<1x1xf32> to vector<2x1xf32>
    %25 = arith.addf %22, %24 : vector<2x1xf32>
    %cst_19 = arith.constant 0.000000e+00 : f32
    %26 = vector.broadcast %cst_19 : f32 to vector<2x1xf32>
    %27 = arith.subf %26, %25 : vector<2x1xf32>
    %28 = math.exp %27 : vector<2x1xf32>
    %cst_20 = arith.constant 1.000000e+00 : f32
    %29 = vector.broadcast %cst_20 : f32 to vector<2x1xf32>
    %30 = arith.addf %29, %28 : vector<2x1xf32>
    %cst_21 = arith.constant 1.000000e+00 : f32
    %31 = vector.broadcast %cst_21 : f32 to vector<2x1xf32>
    %32 = arith.divf %31, %30 : vector<2x1xf32>
    %c0_22 = arith.constant 0 : index
    %c0_23 = arith.constant 0 : index
    %33 = vector.load %arg7[%c0_22, %c0_23] : memref<2x1xf32, #tpu.memory_space<vmem>>, vector<2x1xf32>
    tpu.vector_store %arg7[%c0_22, %c0_23], %32 {strides = array<i32>} : memref<2x1xf32, #tpu.memory_space<vmem>>, vector<2x1xf32>,
    return
  }
}

</mosaic_0001>

<bundles_post_ra>
// kernel: discriminator_forward.6
= control target key start
LH: loop header
LB: loop body
LE: loop exit
PB: predicated region body
PF: predicated region fallthrough
CT: control target
= control target key end

     0   :  { %s1986_s12 = smov 0   ;;  %s1988_s13 = smov 0   ;;  %s2428_s0 = inlined_call_operand.vmem [shape: f32[8,9], index: 0, kind: input, shape index: {}]   ;;  %s2429_s1 = inlined_call_operand.vmem [shape: f32[9,8192], index: 1, kind: input, shape index: {}]   ;;  %s2430_s2 = inlined_call_operand.vmem [shape: f32[8,1], index: 2, kind: input, shape index: {}]   ;;  %s2431_s3 = inlined_call_operand.vmem [shape: f32[8,8192], index: 3, kind: output, shape index: {}]  }
   0x1   :  { %s1990_s14 = smov 0  }
   0x2 LB: > { %s1753_s15 = sadd.s32 4294967295, %s1961_s14   ;;  %s2003_s16 = sadd.s32 1, %s1961_s14   ;;  %s1961_s14 = sphi %s1990_s14, %s2436_s14   ;;  %s1957_s13 = sphi %s1988_s13, %s2435_s13   ;;  %s1953_s12 = sphi %s1986_s12, %s2434_s12  }
   0x3   : > { %s38_s17 = ssub.s32 %s1961_s14, %s2003_s16  ;;  %s41_s18 = sadd.s32 1, %s1957_s13 }
   0x4   : > { %p39_p0 = scmp.eq.s32.totalorder %s38_s17, 0  ;;  %p48_p1 = scmp.ne.s32.totalorder %s1957_s13, %s1953_s12 }
   0x5   : > { %p49_p2 = scmp.eq.s32.totalorder %s1961_s14, 0  ;;  %p1756_p4 = scmp.ge.s32.totalorder %s1961_s14, 2 }
   0x6   : > { %s2012_s19 = scalar_select %p39_p0, %s1957_s13, %s41_s18  }
   0x7   : > { %p50_p3 = por %p49_p2, %p48_p1  ;;  %127 = sbr.rel (%p1756_p4) target bundleno = 50 (0x32), region = 24 }
   0xe   : > { %130 = sbr.rel (!%p50_p3) target bundleno = 50 (0x32), region = 28  ;;  %s132_s20 = sand.u32 (%p50_p3), 1, %s1957_s13  }
   0xf   : > { %s1814_s21 = sshll.u32 (%p50_p3), %s1961_s14, 8  ;;  %s1757_s22 = sshll.u32 (%p50_p3), %s132_s20, 9 }
  0x10   : > { %s2020_s25 = scalar_lea.vmem (%p50_p3), %s2429_s1, %s1814_s21  ;;  %s2025_s26 = scalar_lea.vmem (%p50_p3), [#allocation2], %s1757_s22 }
  0x11   : > { %v150_v0 = vld [vmem:[%s2020_s25] sm:$0xff] (%p50_p3)  ;;  %v152_v1 = vld [vmem:[%s2020_s25 + $0x8] sm:$0xff] (%p50_p3)  ;;  %v154_v2 = vld [vmem:[%s2020_s25 + $0x10] sm:$0xff] (%p50_p3) }
  0x12   : > { %151 = vst [vmem:[%s2025_s26] sm:$0xff] (%p50_p3), %v150_v0  ;;  %153 = vst [vmem:[%s2025_s26 + $0x8] sm:$0xff] (%p50_p3), %v152_v1  ;;  %v156_v3 = vld [vmem:[%s2020_s25 + $0x18] sm:$0xff] (%p50_p3)  ;;  %v158_v4 = vld [vmem:[%s2020_s25 + $0x20] sm:$0xff] (%p50_p3) }
  0x13   : > { %155 = vst [vmem:[%s2025_s26 + $0x10] sm:$0xff] (%p50_p3), %v154_v2  ;;  %v160_v5 = vld [vmem:[%s2020_s25 + $0x28] sm:$0xff] (%p50_p3)  ;;  %157 = vst [vmem:[%s2025_s26 + $0x18] sm:$0xff] (%p50_p3), %v156_v3  ;;  %v162_v6 = vld [vmem:[%s2020_s25 + $0x30] sm:$0xff] (%p50_p3) }
  0x14   : > { %159 = vst [vmem:[%s2025_s26 + $0x20] sm:$0xff] (%p50_p3), %v158_v4  ;;  %161 = vst [vmem:[%s2025_s26 + $0x28] sm:$0xff] (%p50_p3), %v160_v5  ;;  %v164_v7 = vld [vmem:[%s2020_s25 + $0x38] sm:$0xff] (%p50_p3)  ;;  %v166_v8 = vld [vmem:[%s2020_s25 + $0x40] sm:$0xff] (%p50_p3) }
  0x15   : > { %163 = vst [vmem:[%s2025_s26 + $0x30] sm:$0xff] %v162_v6  ;;  %165 = vst [vmem:[%s2025_s26 + $0x38] sm:$0xff] %v164_v7  ;;  %v168_v9 = vld [vmem:[%s2020_s25 + $0x48] sm:$0xff]  ;;  %v170_v10 = vld [vmem:[%s2020_s25 + $0x50] sm:$0xff] }
  0x16   : > { %167 = vst [vmem:[%s2025_s26 + $0x40] sm:$0xff] %v166_v8  ;;  %v172_v11 = vld [vmem:[%s2020_s25 + $0x58] sm:$0xff]  ;;  %169 = vst [vmem:[%s2025_s26 + $0x48] sm:$0xff] %v168_v9  ;;  %v174_v12 = vld [vmem:[%s2020_s25 + $0x60] sm:$0xff] }
  0x17   : > { %171 = vst [vmem:[%s2025_s26 + $0x50] sm:$0xff] %v170_v10  ;;  %173 = vst [vmem:[%s2025_s26 + $0x58] sm:$0xff] %v172_v11  ;;  %v176_v13 = vld [vmem:[%s2020_s25 + $0x68] sm:$0xff]  ;;  %v178_v14 = vld [vmem:[%s2020_s25 + $0x70] sm:$0xff] }
  0x18   : > { %175 = vst [vmem:[%s2025_s26 + $0x60] sm:$0xff] %v174_v12  ;;  %177 = vst [vmem:[%s2025_s26 + $0x68] sm:$0xff] %v176_v13  ;;  %v180_v15 = vld [vmem:[%s2020_s25 + $0x78] sm:$0xff]  ;;  %v182_v16 = vld [vmem:[%s2020_s25 + $0x80] sm:$0xff] }
  0x19   : > { %179 = vst [vmem:[%s2025_s26 + $0x70] sm:$0xff] %v178_v14  ;;  %v184_v17 = vld [vmem:[%s2020_s25 + $0x88] sm:$0xff]  ;;  %181 = vst [vmem:[%s2025_s26 + $0x78] sm:$0xff] %v180_v15  ;;  %v186_v18 = vld [vmem:[%s2020_s25 + $0x90] sm:$0xff] }
  0x1a   : > { %183 = vst [vmem:[%s2025_s26 + $0x80] sm:$0xff] %v182_v16  ;;  %185 = vst [vmem:[%s2025_s26 + $0x88] sm:$0xff] %v184_v17  ;;  %v188_v19 = vld [vmem:[%s2020_s25 + $0x98] sm:$0xff]  ;;  %v190_v20 = vld [vmem:[%s2020_s25 + $0xa0] sm:$0xff] }
  0x1b   : > { %187 = vst [vmem:[%s2025_s26 + $0x90] sm:$0xff] %v186_v18  ;;  %189 = vst [vmem:[%s2025_s26 + $0x98] sm:$0xff] %v188_v19  ;;  %v192_v21 = vld [vmem:[%s2020_s25 + $0xa8] sm:$0xff]  ;;  %v194_v22 = vld [vmem:[%s2020_s25 + $0xb0] sm:$0xff] }
  0x1c   : > { %191 = vst [vmem:[%s2025_s26 + $0xa0] sm:$0xff] %v190_v20  ;;  %v196_v23 = vld [vmem:[%s2020_s25 + $0xb8] sm:$0xff]  ;;  %193 = vst [vmem:[%s2025_s26 + $0xa8] sm:$0xff] %v192_v21  ;;  %v198_v24 = vld [vmem:[%s2020_s25 + $0xc0] sm:$0xff] }
  0x1d   : > { %195 = vst [vmem:[%s2025_s26 + $0xb0] sm:$0xff] %v194_v22  ;;  %197 = vst [vmem:[%s2025_s26 + $0xb8] sm:$0xff] %v196_v23  ;;  %v200_v25 = vld [vmem:[%s2020_s25 + $0xc8] sm:$0xff]  ;;  %v202_v26 = vld [vmem:[%s2020_s25 + $0xd0] sm:$0xff] }
  0x1e   : > { %199 = vst [vmem:[%s2025_s26 + $0xc0] sm:$0xff] %v198_v24  ;;  %201 = vst [vmem:[%s2025_s26 + $0xc8] sm:$0xff] %v200_v25  ;;  %v204_v27 = vld [vmem:[%s2020_s25 + $0xd8] sm:$0xff]  ;;  %v206_v28 = vld [vmem:[%s2020_s25 + $0xe0] sm:$0xff] }
  0x1f   : > { %203 = vst [vmem:[%s2025_s26 + $0xd0] sm:$0xff] %v202_v26  ;;  %v208_v29 = vld [vmem:[%s2020_s25 + $0xe8] sm:$0xff]  ;;  %205 = vst [vmem:[%s2025_s26 + $0xd8] sm:$0xff] %v204_v27  ;;  %v210_v30 = vld [vmem:[%s2020_s25 + $0xf0] sm:$0xff] }
  0x20   : > { %207 = vst [vmem:[%s2025_s26 + $0xe0] sm:$0xff] %v206_v28  ;;  %209 = vst [vmem:[%s2025_s26 + $0xe8] sm:$0xff] %v208_v29  ;;  %v212_v31 = vld [vmem:[%s2020_s25 + $0xf8] sm:$0xff]  ;;  %v214_v32 = vld [vmem:[%s2020_s25 + $0x200] sm:$0xff] }
  0x21   : > { %211 = vst [vmem:[%s2025_s26 + $0xf0] sm:$0xff] %v210_v30  ;;  %213 = vst [vmem:[%s2025_s26 + $0xf8] sm:$0xff] %v212_v31  ;;  %v216_v33 = vld [vmem:[%s2020_s25 + $0x208] sm:$0xff]  ;;  %v218_v34 = vld [vmem:[%s2020_s25 + $0x210] sm:$0xff] }
  0x22   : > { %215 = vst [vmem:[%s2025_s26 + $0x100] sm:$0xff] %v214_v32  ;;  %v220_v35 = vld [vmem:[%s2020_s25 + $0x218] sm:$0xff]  ;;  %217 = vst [vmem:[%s2025_s26 + $0x108] sm:$0xff] %v216_v33  ;;  %v222_v36 = vld [vmem:[%s2020_s25 + $0x220] sm:$0xff] }
  0x23   : > { %219 = vst [vmem:[%s2025_s26 + $0x110] sm:$0xff] %v218_v34  ;;  %221 = vst [vmem:[%s2025_s26 + $0x118] sm:$0xff] %v220_v35  ;;  %v224_v37 = vld [vmem:[%s2020_s25 + $0x228] sm:$0xff]  ;;  %v226_v38 = vld [vmem:[%s2020_s25 + $0x230] sm:$0xff] }
  0x24   : > { %223 = vst [vmem:[%s2025_s26 + $0x120] sm:$0xff] %v222_v36  ;;  %225 = vst [vmem:[%s2025_s26 + $0x128] sm:$0xff] %v224_v37  ;;  %v228_v39 = vld [vmem:[%s2020_s25 + $0x238] sm:$0xff]  ;;  %v230_v40 = vld [vmem:[%s2020_s25 + $0x240] sm:$0xff] }
  0x25   : > { %227 = vst [vmem:[%s2025_s26 + $0x130] sm:$0xff] %v226_v38  ;;  %v232_v41 = vld [vmem:[%s2020_s25 + $0x248] sm:$0xff]  ;;  %229 = vst [vmem:[%s2025_s26 + $0x138] sm:$0xff] %v228_v39  ;;  %v234_v42 = vld [vmem:[%s2020_s25 + $0x250] sm:$0xff] }
  0x26   : > { %231 = vst [vmem:[%s2025_s26 + $0x140] sm:$0xff] %v230_v40  ;;  %233 = vst [vmem:[%s2025_s26 + $0x148] sm:$0xff] %v232_v41  ;;  %v236_v43 = vld [vmem:[%s2020_s25 + $0x258] sm:$0xff]  ;;  %v238_v44 = vld [vmem:[%s2020_s25 + $0x260] sm:$0xff] }
  0x27   : > { %235 = vst [vmem:[%s2025_s26 + $0x150] sm:$0xff] %v234_v42  ;;  %237 = vst [vmem:[%s2025_s26 + $0x158] sm:$0xff] %v236_v43  ;;  %v240_v45 = vld [vmem:[%s2020_s25 + $0x268] sm:$0xff]  ;;  %v242_v46 = vld [vmem:[%s2020_s25 + $0x270] sm:$0xff] }
  0x28   : > { %239 = vst [vmem:[%s2025_s26 + $0x160] sm:$0xff] %v238_v44  ;;  %v244_v47 = vld [vmem:[%s2020_s25 + $0x278] sm:$0xff]  ;;  %241 = vst [vmem:[%s2025_s26 + $0x168] sm:$0xff] %v240_v45  ;;  %v246_v48 = vld [vmem:[%s2020_s25 + $0x280] sm:$0xff] }
  0x29   : > { %243 = vst [vmem:[%s2025_s26 + $0x170] sm:$0xff] %v242_v46  ;;  %245 = vst [vmem:[%s2025_s26 + $0x178] sm:$0xff] %v244_v47  ;;  %v248_v49 = vld [vmem:[%s2020_s25 + $0x288] sm:$0xff]  ;;  %v250_v50 = vld [vmem:[%s2020_s25 + $0x290] sm:$0xff] }
  0x2a   : > { %247 = vst [vmem:[%s2025_s26 + $0x180] sm:$0xff] %v246_v48  ;;  %249 = vst [vmem:[%s2025_s26 + $0x188] sm:$0xff] %v248_v49  ;;  %v252_v51 = vld [vmem:[%s2020_s25 + $0x298] sm:$0xff]  ;;  %v254_v52 = vld [vmem:[%s2020_s25 + $0x2a0] sm:$0xff] }
  0x2b   : > { %251 = vst [vmem:[%s2025_s26 + $0x190] sm:$0xff] %v250_v50  ;;  %v256_v53 = vld [vmem:[%s2020_s25 + $0x2a8] sm:$0xff]  ;;  %253 = vst [vmem:[%s2025_s26 + $0x198] sm:$0xff] %v252_v51  ;;  %v258_v54 = vld [vmem:[%s2020_s25 + $0x2b0] sm:$0xff] }
  0x2c   : > { %255 = vst [vmem:[%s2025_s26 + $0x1a0] sm:$0xff] %v254_v52  ;;  %257 = vst [vmem:[%s2025_s26 + $0x1a8] sm:$0xff] %v256_v53  ;;  %v260_v55 = vld [vmem:[%s2020_s25 + $0x2b8] sm:$0xff]  ;;  %v262_v56 = vld [vmem:[%s2020_s25 + $0x2c0] sm:$0xff] }
  0x2d   : > { %259 = vst [vmem:[%s2025_s26 + $0x1b0] sm:$0xff] %v258_v54  ;;  %261 = vst [vmem:[%s2025_s26 + $0x1b8] sm:$0xff] %v260_v55  ;;  %v264_v57 = vld [vmem:[%s2020_s25 + $0x2c8] sm:$0xff]  ;;  %v266_v58 = vld [vmem:[%s2020_s25 + $0x2d0] sm:$0xff] }
  0x2e   : > { %263 = vst [vmem:[%s2025_s26 + $0x1c0] sm:$0xff] %v262_v56  ;;  %v268_v59 = vld [vmem:[%s2020_s25 + $0x2d8] sm:$0xff]  ;;  %265 = vst [vmem:[%s2025_s26 + $0x1c8] sm:$0xff] %v264_v57  ;;  %v270_v60 = vld [vmem:[%s2020_s25 + $0x2e0] sm:$0xff] }
  0x2f   : > { %267 = vst [vmem:[%s2025_s26 + $0x1d0] sm:$0xff] %v266_v58  ;;  %269 = vst [vmem:[%s2025_s26 + $0x1d8] sm:$0xff] %v268_v59  ;;  %v272_v61 = vld [vmem:[%s2020_s25 + $0x2e8] sm:$0xff]  ;;  %v274_v62 = vld [vmem:[%s2020_s25 + $0x2f0] sm:$0xff] }
  0x30   : > { %271 = vst [vmem:[%s2025_s26 + $0x1e0] sm:$0xff] %v270_v60  ;;  %273 = vst [vmem:[%s2025_s26 + $0x1e8] sm:$0xff] %v272_v61  ;;  %v276_v63 = vld [vmem:[%s2020_s25 + $0x2f8] sm:$0xff] }
  0x31   : > { %275 = vst [vmem:[%s2025_s26 + $0x1f0] sm:$0xff] %v274_v62  ;;  %277 = vst [vmem:[%s2025_s26 + $0x1f8] sm:$0xff] %v276_v63 }
  0x32 PF: > { %p1760_p5 = scmp.ge.s32.totalorder %s1961_s14, 1  ;;  %p282_p6 = scmp.lt.s32.totalorder %s1961_s14, 3 }
  0x34   : > { %p283_p7 = pnand %p1760_p5, %p282_p6 }
  0x35   : > { %s289_s27 = sand.u32 (!%p283_p7), 1, %s1953_s12   ;;  %vm394_vm0 = vcmask (!%p283_p7), 1040384   ;;  %v1963_v0 = vmov (!%p283_p7), 0.0   ;;  %v384_v1 = vld [vmem:[%s2430_s2] sm:$0xff] (!%p283_p7)  ;;  %vm1964_vm1 = vmmov (!%p283_p7), 1   ;;  %v1965_v3 = vmov (!%p283_p7), 0  }
  0x36   : > { %286 = sbr.rel (%p283_p7) target bundleno = 311 (0x137), region = 51  ;;  %s1761_s28 = sshll.u32 (!%p283_p7), %s289_s27, 9  ;;  %555 = vmatprep.mubr.f32.mxu0 (!%p283_p7), %v1963_v0  ;;  %626 = vmatprep.mubr.f32.mxu1 (!%p283_p7), %v1963_v0  ;;  %vm2160_vm2 = vmpackc.low (!%p283_p7), %vm394_vm0, %vm1964_vm1  ;;  %v2177_v15 = vld [vmem:[%s2428_s0] sm:$0xff] (!%p283_p7)  ;;  %vm390_vm3 = vcmask (!%p283_p7), 72704  }
  0x37   : > { %1938 = vset.pattern.permute.xlu0 (!%p283_p7), %v1965_v3  ;;  %s2164_s4 = scalar_lea.vmem (!%p283_p7), [#allocation2], %s1761_s28  ;;  %s1762_s7 = sshll.u32 (!%p283_p7), %s1753_s15, 5 }
  0x38   : > { %v321_v4 = vld [vmem:[%s2164_s4 + $0x8] sm:$0xff] (!%p283_p7)  ;;  %v323_v6 = vld [vmem:[%s2164_s4 + $0x18] sm:$0xff] (!%p283_p7)  ;;  %387 = vperm.xlu0 (!%p283_p7), %1938, %v384_v1   ;;  %v320_v9 = vld [vmem:[%s2164_s4] sm:$0xff] (!%p283_p7)  ;;  %p314_p8 = scmp.lt.s32.totalorder (!%p283_p7), %s1762_s7, 63 }
  0x39   : > { %v353_v5 = vld [vmem:[%s2164_s4 + $0x108] sm:$0x1] (!%p283_p7)  ;;  %v355_v8 = vld [vmem:[%s2164_s4 + $0x118] sm:$0x1] (!%p283_p7)  ;;  %v352_v10 = vld [vmem:[%s2164_s4 + $0x100] sm:$0x1] (!%p283_p7) }
  0x3a   : > { %v1815_v7 = vpack.c.bf16 (!%p283_p7), %v353_v5, %v321_v4  ;;  %v1821_v11 = vpack.c.bf16 (!%p283_p7), %v355_v8, %v323_v6  ;;  %v1818_v12 = vpack.c.bf16 (!%p283_p7), %v352_v10, %v320_v9  ;;  %v322_v13 = vld [vmem:[%s2164_s4 + $0x10] sm:$0xff] (!%p283_p7)  ;;  %v325_v16 = vld [vmem:[%s2164_s4 + $0x28] sm:$0xff] (!%p283_p7)  ;;  %v327_v19 = vld [vmem:[%s2164_s4 + $0x38] sm:$0xff] (!%p283_p7) }
  0x3b   : > { %v354_v14 = vld [vmem:[%s2164_s4 + $0x110] sm:$0x1] (!%p283_p7)  ;;  %v357_v18 = vld [vmem:[%s2164_s4 + $0x128] sm:$0x1] (!%p283_p7)  ;;  %v359_v20 = vld [vmem:[%s2164_s4 + $0x138] sm:$0x1] (!%p283_p7) }
  0x3c   : > { %1817 = vmatprep.subr.msk.bf16.mxu0 (!%p283_p7), %vm2160_vm2, %v1815_v7  ;;  %v1824_v17 = vpack.c.bf16 (!%p283_p7), %v354_v14, %v322_v13  ;;  %1823 = vmatprep.subr.msk.bf16.mxu1 (!%p283_p7), %vm2160_vm2, %v1821_v11  ;;  %v1827_v21 = vpack.c.bf16 (!%p283_p7), %v357_v18, %v325_v16  ;;  %v1833_v22 = vpack.c.bf16 (!%p283_p7), %v359_v20, %v327_v19  ;;  %v324_v23 = vld [vmem:[%s2164_s4 + $0x20] sm:$0xff] (!%p283_p7)  ;;  %v326_v25 = vld [vmem:[%s2164_s4 + $0x30] sm:$0xff] (!%p283_p7)  ;;  %v329_v28 = vld [vmem:[%s2164_s4 + $0x48] sm:$0xff] (!%p283_p7) }
  0x3d   : > { %1820 = vmatpush1.bf16.msk.msra.mxu0 %vm2160_vm2, %v1818_v12  ;;  %v356_v24 = vld [vmem:[%s2164_s4 + $0x120] sm:$0x1]  ;;  %v358_v27 = vld [vmem:[%s2164_s4 + $0x130] sm:$0x1]  ;;  %v361_v29 = vld [vmem:[%s2164_s4 + $0x148] sm:$0x1] }
  0x3e   : > { %1826 = vmatpush1.bf16.msk.msra.mxu1 %vm2160_vm2, %v1824_v17  ;;  %v1830_v26 = vpack.c.bf16 %v356_v24, %v324_v23  ;;  %1829 = vmatprep.subr.msk.bf16.mxu0 %vm2160_vm2, %v1827_v21  ;;  %v1836_v30 = vpack.c.bf16 %v358_v27, %v326_v25  ;;  %v1839_v31 = vpack.c.bf16 %v361_v29, %v329_v28  ;;  %v331_v32 = vld [vmem:[%s2164_s4 + $0x58] sm:$0xff]  ;;  %v328_v34 = vld [vmem:[%s2164_s4 + $0x40] sm:$0xff]  ;;  %v330_v37 = vld [vmem:[%s2164_s4 + $0x50] sm:$0xff]  ;;  %s2438_s7 = smov (!%p314_p8, %s1762_s7), 63 }
  0x3f   : > { %1835 = vmatprep.subr.msk.bf16.mxu1 %vm2160_vm2, %v1833_v22  ;;  %v363_v33 = vld [vmem:[%s2164_s4 + $0x158] sm:$0x1]  ;;  %v360_v36 = vld [vmem:[%s2164_s4 + $0x140] sm:$0x1]  ;;  %v362_v38 = vld [vmem:[%s2164_s4 + $0x150] sm:$0x1] }
  0x40   : > { %1766 = vmatmul.mubr.msk.f32.vlgmr.msra.gmra.mrb[0].mxu0 %vm390_vm3, %v2177_v15  ;;  %v1845_v35 = vpack.c.bf16 %v363_v33, %v331_v32  ;;  %v1842_v39 = vpack.c.bf16 %v360_v36, %v328_v34  ;;  %v333_v40 = vld [vmem:[%s2164_s4 + $0x68] sm:$0xff]  ;;  %v335_v42 = vld [vmem:[%s2164_s4 + $0x78] sm:$0xff]  ;;  %v1848_v43 = vpack.c.bf16 %v362_v38, %v330_v37  ;;  %v332_v45 = vld [vmem:[%s2164_s4 + $0x60] sm:$0xff]  ;;  %s1763_s8 = sshll.u32 %s2438_s7, 3 }
  0x41   : > { %1769 = vmatmul.mubr.msk.f32.vlgmr.msra.gmra.mrb[0].mxu1 %vm390_vm3, %v2177_v15  ;;  %1832 = vmatpush1.bf16.msk.msra.mxu0 %vm2160_vm2, %v1830_v26  ;;  %v365_v41 = vld [vmem:[%s2164_s4 + $0x168] sm:$0x1]  ;;  %v367_v44 = vld [vmem:[%s2164_s4 + $0x178] sm:$0x1]  ;;  %v364_v46 = vld [vmem:[%s2164_s4 + $0x160] sm:$0x1]  ;;  %s2353_s11 = scalar_lea.vmem %s2431_s3, %s1763_s8 }
  0x42   : > { %1838 = vmatpush1.bf16.msk.msra.mxu1 %vm2160_vm2, %v1836_v30  ;;  %697 = vmatprep.mubr.f32.mxu0 %v1963_v0  ;;  %v1851_v47 = vpack.c.bf16 %v365_v41, %v333_v40  ;;  %v334_v48 = vld [vmem:[%s2164_s4 + $0x70] sm:$0xff]  ;;  %v1857_v50 = vpack.c.bf16 %v367_v44, %v335_v42  ;;  %v337_v51 = vld [vmem:[%s2164_s4 + $0x88] sm:$0xff]  ;;  %v1854_v53 = vpack.c.bf16 %v364_v46, %v332_v45  ;;  %v339_v54 = vld [vmem:[%s2164_s4 + $0x98] sm:$0xff] }
  0x43   : > { %768 = vmatprep.mubr.f32.mxu1 %v1963_v0  ;;  %1841 = vmatprep.subr.msk.bf16.mxu0 %vm2160_vm2, %v1839_v31  ;;  %v366_v49 = vld [vmem:[%s2164_s4 + $0x170] sm:$0x1]  ;;  %v369_v52 = vld [vmem:[%s2164_s4 + $0x188] sm:$0x1]  ;;  %v371_v55 = vld [vmem:[%s2164_s4 + $0x198] sm:$0x1] }
  0x44   : > { %1772 = vmatmul.mubr.msk.f32.vlgmr.msra.gmra.mrb[2].mxu0 %vm390_vm3, %v2177_v15  ;;  %1847 = vmatprep.subr.msk.bf16.mxu1 %vm2160_vm2, %v1845_v35  ;;  %v1860_v56 = vpack.c.bf16 %v366_v49, %v334_v48  ;;  %v336_v57 = vld [vmem:[%s2164_s4 + $0x80] sm:$0xff]  ;;  %v1863_v59 = vpack.c.bf16 %v369_v52, %v337_v51  ;;  %v338_v60 = vld [vmem:[%s2164_s4 + $0x90] sm:$0xff]  ;;  %v1869_v62 = vpack.c.bf16 %v371_v55, %v339_v54  ;;  %v341_v63 = vld [vmem:[%s2164_s4 + $0xa8] sm:$0xff] }
  0x45   : > { %1775 = vmatmul.mubr.msk.f32.vlgmr.msra.gmra.mrb[2].mxu1 %vm390_vm3, %v2177_v15  ;;  %1844 = vmatpush1.bf16.msk.msra.mxu0 %vm2160_vm2, %v1842_v39  ;;  %v368_v58 = vld [vmem:[%s2164_s4 + $0x180] sm:$0x1]  ;;  %v370_v61 = vld [vmem:[%s2164_s4 + $0x190] sm:$0x1]  ;;  %v373_v1 = vld [vmem:[%s2164_s4 + $0x1a8] sm:$0x1] }
  0x46   : > { %1850 = vmatpush1.bf16.msk.msra.mxu1 %vm2160_vm2, %v1848_v43  ;;  %839 = vmatprep.mubr.f32.mxu0 %v1963_v0  ;;  %v1866_v3 = vpack.c.bf16 %v368_v58, %v336_v57  ;;  %v343_v4 = vld [vmem:[%s2164_s4 + $0xb8] sm:$0xff]  ;;  %v1872_v6 = vpack.c.bf16 %v370_v61, %v338_v60  ;;  %v340_v7 = vld [vmem:[%s2164_s4 + $0xa0] sm:$0xff]  ;;  %v1875_v9 = vpack.c.bf16 %v373_v1, %v341_v63  ;;  %v342_v10 = vld [vmem:[%s2164_s4 + $0xb0] sm:$0xff] }
  0x47   : > { %910 = vmatprep.mubr.f32.mxu1 %v1963_v0  ;;  %1853 = vmatprep.subr.msk.bf16.mxu0 %vm2160_vm2, %v1851_v47  ;;  %v375_v5 = vld [vmem:[%s2164_s4 + $0x1b8] sm:$0x1]  ;;  %v372_v8 = vld [vmem:[%s2164_s4 + $0x1a0] sm:$0x1]  ;;  %v374_v11 = vld [vmem:[%s2164_s4 + $0x1b0] sm:$0x1] }
  0x48   : > { %1778 = vmatmul.mubr.msk.f32.vlgmr.msra.gmra.mrb[4].mxu0 %vm390_vm3, %v2177_v15  ;;  %1859 = vmatprep.subr.msk.bf16.mxu1 %vm2160_vm2, %v1857_v50  ;;  %v1881_v12 = vpack.c.bf16 %v375_v5, %v343_v4  ;;  %v345_v13 = vld [vmem:[%s2164_s4 + $0xc8] sm:$0xff]  ;;  %v1878_v16 = vpack.c.bf16 %v372_v8, %v340_v7  ;;  %v347_v17 = vld [vmem:[%s2164_s4 + $0xd8] sm:$0xff]  ;;  %v1884_v19 = vpack.c.bf16 %v374_v11, %v342_v10  ;;  %v344_v20 = vld [vmem:[%s2164_s4 + $0xc0] sm:$0xff] }
  0x49   : > { %1781 = vmatmul.mubr.msk.f32.vlgmr.msra.gmra.mrb[4].mxu1 %vm390_vm3, %v2177_v15  ;;  %1856 = vmatpush1.bf16.msk.msra.mxu0 %vm2160_vm2, %v1854_v53  ;;  %v377_v14 = vld [vmem:[%s2164_s4 + $0x1c8] sm:$0x1]  ;;  %v379_v18 = vld [vmem:[%s2164_s4 + $0x1d8] sm:$0x1]  ;;  %v376_v21 = vld [vmem:[%s2164_s4 + $0x1c0] sm:$0x1] }
  0x4a   : > { %1862 = vmatpush1.bf16.msk.msra.mxu1 %vm2160_vm2, %v1860_v56  ;;  %981 = vmatprep.mubr.f32.mxu0 %v1963_v0  ;;  %v1887_v22 = vpack.c.bf16 %v377_v14, %v345_v13  ;;  %v346_v23 = vld [vmem:[%s2164_s4 + $0xd0] sm:$0xff]  ;;  %v1893_v25 = vpack.c.bf16 %v379_v18, %v347_v17  ;;  %v349_v26 = vld [vmem:[%s2164_s4 + $0xe8] sm:$0xff]  ;;  %v1890_v28 = vpack.c.bf16 %v376_v21, %v344_v20  ;;  %v351_v29 = vld [vmem:[%s2164_s4 + $0xf8] sm:$0xff] }
  0x4b   : > { %1052 = vmatprep.mubr.f32.mxu1 %v1963_v0  ;;  %1865 = vmatprep.subr.msk.bf16.mxu0 %vm2160_vm2, %v1863_v59  ;;  %v378_v24 = vld [vmem:[%s2164_s4 + $0x1d0] sm:$0x1]  ;;  %v381_v27 = vld [vmem:[%s2164_s4 + $0x1e8] sm:$0x1]  ;;  %v383_v30 = vld [vmem:[%s2164_s4 + $0x1f8] sm:$0x1] }
  0x4c   : > { %1784 = vmatmul.mubr.msk.f32.vlgmr.msra.gmra.mrb[6].mxu0 %vm390_vm3, %v2177_v15  ;;  %1871 = vmatprep.subr.msk.bf16.mxu1 %vm2160_vm2, %v1869_v62  ;;  %v1896_v31 = vpack.c.bf16 %v378_v24, %v346_v23  ;;  %v348_v32 = vld [vmem:[%s2164_s4 + $0xe0] sm:$0xff]  ;;  %v1899_v34 = vpack.c.bf16 %v381_v27, %v349_v26  ;;  %v350_v35 = vld [vmem:[%s2164_s4 + $0xf0] sm:$0xff]  ;;  %v1905_v37 = vpack.c.bf16 %v383_v30, %v351_v29 }
  0x4d   : > { %1787 = vmatmul.mubr.msk.f32.vlgmr.msra.gmra.mrb[6].mxu1 %vm390_vm3, %v2177_v15  ;;  %1868 = vmatpush1.bf16.msk.msra.mxu0 %vm2160_vm2, %v1866_v3  ;;  %v380_v33 = vld [vmem:[%s2164_s4 + $0x1e0] sm:$0x1]  ;;  %v382_v36 = vld [vmem:[%s2164_s4 + $0x1f0] sm:$0x1] }
  0x4e   : > { %1874 = vmatpush1.bf16.msk.msra.mxu1 %vm2160_vm2, %v1872_v6  ;;  %1123 = vmatprep.mubr.f32.mxu0 %v1963_v0  ;;  %v1902_v38 = vpack.c.bf16 %v380_v33, %v348_v32  ;;  %v1908_v39 = vpack.c.bf16 %v382_v36, %v350_v35 }
  0x4f   : > { %1194 = vmatprep.mubr.f32.mxu1 %v1963_v0  ;;  %1877 = vmatprep.subr.msk.bf16.mxu0 %vm2160_vm2, %v1875_v9 }
  0x50   : > { %1790 = vmatmul.mubr.msk.f32.vlgmr.msra.gmra.mrb[8].mxu0 %vm390_vm3, %v2177_v15  ;;  %1883 = vmatprep.subr.msk.bf16.mxu1 %vm2160_vm2, %v1881_v12 }
  0x51   : > { %1793 = vmatmul.mubr.msk.f32.vlgmr.msra.gmra.mrb[8].mxu1 %vm390_vm3, %v2177_v15  ;;  %1880 = vmatpush1.bf16.msk.msra.mxu0 %vm2160_vm2, %v1878_v16 }
  0x52   : > { %1886 = vmatpush1.bf16.msk.msra.mxu1 %vm2160_vm2, %v1884_v19  ;;  %1265 = vmatprep.mubr.f32.mxu0 %v1963_v0 }
  0x53   : > { %1336 = vmatprep.mubr.f32.mxu1 %v1963_v0  ;;  %1889 = vmatprep.subr.msk.bf16.mxu0 %vm2160_vm2, %v1887_v22 }
  0x54   : > { %1796 = vmatmul.mubr.msk.f32.vlgmr.msra.gmra.mrb[10].mxu0 %vm390_vm3, %v2177_v15  ;;  %1895 = vmatprep.subr.msk.bf16.mxu1 %vm2160_vm2, %v1893_v25 }
  0x55   : > { %1799 = vmatmul.mubr.msk.f32.vlgmr.msra.gmra.mrb[10].mxu1 %vm390_vm3, %v2177_v15  ;;  %1892 = vmatpush1.bf16.msk.msra.mxu0 %vm2160_vm2, %v1890_v28 }
  0x56   : > { %1898 = vmatpush1.bf16.msk.msra.mxu1 %vm2160_vm2, %v1896_v31  ;;  %1407 = vmatprep.mubr.f32.mxu0 %v1963_v0 }
  0x57   : > { %1478 = vmatprep.mubr.f32.mxu1 %v1963_v0  ;;  %1901 = vmatprep.subr.msk.bf16.mxu0 %vm2160_vm2, %v1899_v34 }
  0x58   : > { %1802 = vmatmul.mubr.msk.f32.vlgmr.msra.gmra.mrb[12].mxu0 %vm390_vm3, %v2177_v15  ;;  %1907 = vmatprep.subr.msk.bf16.mxu1 %vm2160_vm2, %v1905_v37 }
  0x59   : > { %1805 = vmatmul.mubr.msk.f32.vlgmr.msra.gmra.mrb[12].mxu1 %vm390_vm3, %v2177_v15  ;;  %1904 = vmatpush1.bf16.msk.msra.mxu0 %vm2160_vm2, %v1902_v38 }
  0x5a   : > { %1910 = vmatpush1.bf16.msk.msra.mxu1 %vm2160_vm2, %v1908_v39  ;;  %1549 = vmatprep.mubr.f32.mxu0 %v1963_v0 }
  0x5b   : > { %1620 = vmatprep.mubr.f32.mxu1 %v1963_v0 }
  0x5c   : > { %1808 = vmatmul.mubr.msk.f32.vlgmr.msra.gmra.mrb[14].mxu0 %vm390_vm3, %v2177_v15 }
  0x5d   : > { %1811 = vmatmul.mubr.msk.f32.vlgmr.msra.gmra.mrb[14].mxu1 %vm390_vm3, %v2177_v15 }
  0xb7   : > { %v2347_v40 = vpop.permute.xlu0 %387 }
 0x113   : > { %v557_v41 = vpop.f32.mrb[0].mxu0 }
 0x114   : > { %v628_v2 = vpop.f32.mrb[0].mxu1  ;;  %v558_v42 = vadd.f32 %v557_v41, %v2347_v40  ;;  %v559_v43 = vpop.f32.mrb[1].mxu0 }
 0x115   : > { %v629_v0 = vadd.f32 %v628_v2, %v2347_v40  ;;  %v560_v15 = vadd.f32 %v559_v43, %v2347_v40  ;;  %v630_v44 = vpop.f32.mrb[1].mxu1 }
 0x116   : > { %v1627_v45 = vmax.f32 %v558_v42, 0.0  ;;  %v631_v46 = vadd.f32 %v630_v44, %v2347_v40 }
 0x117   : > { %v1629_v47 = vmax.f32 %v629_v0, 0.0  ;;  %v1628_v48 = vmax.f32 %v560_v15, 0.0  ;;  %v699_v49 = vpop.f32.mrb[2].mxu0 }
 0x118   : > { %1659 = vst [vmem:[%s2353_s11] sm:$0xff] %v1627_v45  ;;  %v1630_v50 = vmax.f32 %v631_v46, 0.0  ;;  %v700_v51 = vadd.f32 %v699_v49, %v2347_v40  ;;  %v770_v52 = vpop.f32.mrb[2].mxu1  ;;  %v701_v53 = vpop.f32.mrb[3].mxu0 }
 0x119   : > { %1661 = vst [vmem:[%s2353_s11 + $0x10] sm:$0xff] %v1629_v47  ;;  %1660 = vst [vmem:[%s2353_s11 + $0x8] sm:$0xff] %v1628_v48  ;;  %v771_v54 = vadd.f32 %v770_v52, %v2347_v40  ;;  %v702_v55 = vadd.f32 %v701_v53, %v2347_v40  ;;  %v772_v56 = vpop.f32.mrb[3].mxu1 }
 0x11a   : > { %1662 = vst [vmem:[%s2353_s11 + $0x18] sm:$0xff] %v1630_v50  ;;  %v1631_v57 = vmax.f32 %v700_v51, 0.0  ;;  %v773_v58 = vadd.f32 %v772_v56, %v2347_v40 }
 0x11b   : > { %v1633_v59 = vmax.f32 %v771_v54, 0.0  ;;  %v1632_v60 = vmax.f32 %v702_v55, 0.0  ;;  %v841_v61 = vpop.f32.mrb[4].mxu0 }
 0x11c   : > { %1663 = vst [vmem:[%s2353_s11 + $0x20] sm:$0xff] %v1631_v57  ;;  %v1634_v62 = vmax.f32 %v773_v58, 0.0  ;;  %v842_v63 = vadd.f32 %v841_v61, %v2347_v40  ;;  %v912_v1 = vpop.f32.mrb[4].mxu1  ;;  %v843_v3 = vpop.f32.mrb[5].mxu0 }
 0x11d   : > { %1665 = vst [vmem:[%s2353_s11 + $0x30] sm:$0xff] %v1633_v59  ;;  %1664 = vst [vmem:[%s2353_s11 + $0x28] sm:$0xff] %v1632_v60  ;;  %v913_v4 = vadd.f32 %v912_v1, %v2347_v40  ;;  %v844_v5 = vadd.f32 %v843_v3, %v2347_v40  ;;  %v914_v6 = vpop.f32.mrb[5].mxu1 }
 0x11e   : > { %1666 = vst [vmem:[%s2353_s11 + $0x38] sm:$0xff] %v1634_v62  ;;  %v1635_v7 = vmax.f32 %v842_v63, 0.0  ;;  %v915_v8 = vadd.f32 %v914_v6, %v2347_v40 }
 0x11f   : > { %v1637_v9 = vmax.f32 %v913_v4, 0.0  ;;  %v1636_v10 = vmax.f32 %v844_v5, 0.0  ;;  %v983_v11 = vpop.f32.mrb[6].mxu0 }
 0x120   : > { %1667 = vst [vmem:[%s2353_s11 + $0x40] sm:$0xff] %v1635_v7  ;;  %v1638_v12 = vmax.f32 %v915_v8, 0.0  ;;  %v984_v13 = vadd.f32 %v983_v11, %v2347_v40  ;;  %v1054_v14 = vpop.f32.mrb[6].mxu1  ;;  %v985_v16 = vpop.f32.mrb[7].mxu0 }
 0x121   : > { %1669 = vst [vmem:[%s2353_s11 + $0x50] sm:$0xff] %v1637_v9  ;;  %1668 = vst [vmem:[%s2353_s11 + $0x48] sm:$0xff] %v1636_v10  ;;  %v1055_v17 = vadd.f32 %v1054_v14, %v2347_v40  ;;  %v986_v18 = vadd.f32 %v985_v16, %v2347_v40  ;;  %v1056_v19 = vpop.f32.mrb[7].mxu1 }
 0x122   : > { %1670 = vst [vmem:[%s2353_s11 + $0x58] sm:$0xff] %v1638_v12  ;;  %v1639_v20 = vmax.f32 %v984_v13, 0.0  ;;  %v1057_v21 = vadd.f32 %v1056_v19, %v2347_v40 }
 0x123   : > { %v1641_v22 = vmax.f32 %v1055_v17, 0.0  ;;  %v1640_v23 = vmax.f32 %v986_v18, 0.0  ;;  %v1125_v24 = vpop.f32.mrb[8].mxu0 }
 0x124   : > { %1671 = vst [vmem:[%s2353_s11 + $0x60] sm:$0xff] %v1639_v20  ;;  %v1642_v25 = vmax.f32 %v1057_v21, 0.0  ;;  %v1126_v26 = vadd.f32 %v1125_v24, %v2347_v40  ;;  %v1196_v27 = vpop.f32.mrb[8].mxu1  ;;  %v1127_v28 = vpop.f32.mrb[9].mxu0 }
 0x125   : > { %1673 = vst [vmem:[%s2353_s11 + $0x70] sm:$0xff] %v1641_v22  ;;  %1672 = vst [vmem:[%s2353_s11 + $0x68] sm:$0xff] %v1640_v23  ;;  %v1197_v29 = vadd.f32 %v1196_v27, %v2347_v40  ;;  %v1128_v30 = vadd.f32 %v1127_v28, %v2347_v40  ;;  %v1198_v31 = vpop.f32.mrb[9].mxu1 }
 0x126   : > { %1674 = vst [vmem:[%s2353_s11 + $0x78] sm:$0xff] %v1642_v25  ;;  %v1643_v32 = vmax.f32 %v1126_v26, 0.0  ;;  %v1199_v33 = vadd.f32 %v1198_v31, %v2347_v40 }
 0x127   : > { %v1645_v34 = vmax.f32 %v1197_v29, 0.0  ;;  %v1644_v35 = vmax.f32 %v1128_v30, 0.0  ;;  %v1267_v36 = vpop.f32.mrb[10].mxu0 }
 0x128   : > { %1675 = vst [vmem:[%s2353_s11 + $0x80] sm:$0xff] %v1643_v32  ;;  %v1646_v37 = vmax.f32 %v1199_v33, 0.0  ;;  %v1268_v38 = vadd.f32 %v1267_v36, %v2347_v40  ;;  %v1338_v39 = vpop.f32.mrb[10].mxu1  ;;  %v1269_v41 = vpop.f32.mrb[11].mxu0 }
 0x129   : > { %1677 = vst [vmem:[%s2353_s11 + $0x90] sm:$0xff] %v1645_v34  ;;  %1676 = vst [vmem:[%s2353_s11 + $0x88] sm:$0xff] %v1644_v35  ;;  %v1339_v2 = vadd.f32 %v1338_v39, %v2347_v40  ;;  %v1270_v42 = vadd.f32 %v1269_v41, %v2347_v40  ;;  %v1340_v43 = vpop.f32.mrb[11].mxu1 }
 0x12a   : > { %1678 = vst [vmem:[%s2353_s11 + $0x98] sm:$0xff] %v1646_v37  ;;  %v1647_v0 = vmax.f32 %v1268_v38, 0.0  ;;  %v1341_v15 = vadd.f32 %v1340_v43, %v2347_v40 }
 0x12b   : > { %v1649_v44 = vmax.f32 %v1339_v2, 0.0  ;;  %v1648_v45 = vmax.f32 %v1270_v42, 0.0  ;;  %v1409_v46 = vpop.f32.mrb[12].mxu0 }
 0x12c   : > { %1679 = vst [vmem:[%s2353_s11 + $0xa0] sm:$0xff] %v1647_v0  ;;  %v1650_v47 = vmax.f32 %v1341_v15, 0.0  ;;  %v1410_v48 = vadd.f32 %v1409_v46, %v2347_v40  ;;  %v1480_v49 = vpop.f32.mrb[12].mxu1  ;;  %v1411_v50 = vpop.f32.mrb[13].mxu0 }
 0x12d   : > { %1681 = vst [vmem:[%s2353_s11 + $0xb0] sm:$0xff] %v1649_v44  ;;  %1680 = vst [vmem:[%s2353_s11 + $0xa8] sm:$0xff] %v1648_v45  ;;  %v1481_v51 = vadd.f32 %v1480_v49, %v2347_v40  ;;  %v1412_v52 = vadd.f32 %v1411_v50, %v2347_v40  ;;  %v1482_v53 = vpop.f32.mrb[13].mxu1 }
 0x12e   : > { %1682 = vst [vmem:[%s2353_s11 + $0xb8] sm:$0xff] %v1650_v47  ;;  %v1651_v54 = vmax.f32 %v1410_v48, 0.0  ;;  %v1483_v55 = vadd.f32 %v1482_v53, %v2347_v40 }
 0x12f   : > { %v1653_v56 = vmax.f32 %v1481_v51, 0.0  ;;  %v1652_v57 = vmax.f32 %v1412_v52, 0.0  ;;  %v1551_v58 = vpop.f32.mrb[14].mxu0 }
 0x130   : > { %1683 = vst [vmem:[%s2353_s11 + $0xc0] sm:$0xff] %v1651_v54  ;;  %v1654_v59 = vmax.f32 %v1483_v55, 0.0  ;;  %v1552_v60 = vadd.f32 %v1551_v58, %v2347_v40  ;;  %v1622_v61 = vpop.f32.mrb[14].mxu1  ;;  %v1553_v62 = vpop.f32.mrb[15].mxu0 }
 0x131   : > { %1685 = vst [vmem:[%s2353_s11 + $0xd0] sm:$0xff] %v1653_v56  ;;  %1684 = vst [vmem:[%s2353_s11 + $0xc8] sm:$0xff] %v1652_v57  ;;  %v1623_v63 = vadd.f32 %v1622_v61, %v2347_v40  ;;  %v1554_v1 = vadd.f32 %v1553_v62, %v2347_v40  ;;  %v1624_v3 = vpop.f32.mrb[15].mxu1 }
 0x132   : > { %1686 = vst [vmem:[%s2353_s11 + $0xd8] sm:$0xff] %v1654_v59  ;;  %v1655_v4 = vmax.f32 %v1552_v60, 0.0  ;;  %v1625_v5 = vadd.f32 %v1624_v3, %v2347_v40 }
 0x133   : > { %v1657_v6 = vmax.f32 %v1623_v63, 0.0  ;;  %v1656_v7 = vmax.f32 %v1554_v1, 0.0 }
 0x134   : > { %1687 = vst [vmem:[%s2353_s11 + $0xe0] sm:$0xff] %v1655_v4  ;;  %v1658_v8 = vmax.f32 %v1625_v5, 0.0 }
 0x135   : > { %1689 = vst [vmem:[%s2353_s11 + $0xf0] sm:$0xff] %v1657_v6  ;;  %1688 = vst [vmem:[%s2353_s11 + $0xe8] sm:$0xff] %v1656_v7 }
 0x136   : > { %1690 = vst [vmem:[%s2353_s11 + $0xf8] sm:$0xff] %v1658_v8 }
 0x137 PF: > { %p10_p9 = scmp.ge.s32.totalorder %s2003_s16, 4   ;;  %s2434_s12 = smov %s1957_s13 }
 0x138   : > { %s2435_s13 = smov %s2012_s19  ;;  %s2436_s14 = smov %s2003_s16 }
 0x139   :  { %12 = sbr.rel (!%p10_p9) target bundleno = 2 (0x2), region = 90 }

// kernel: discriminator_forward.7
= control target key start
LH: loop header
LB: loop body
LE: loop exit
PB: predicated region body
PF: predicated region fallthrough
CT: control target
= control target key end

     0   :  { %s935_s12 = smov 0   ;;  %s937_s13 = smov 0   ;;  %s1229_s0 = inlined_call_operand.vmem [shape: f32[8,72], index: 0, kind: input, shape index: {}]   ;;  %s1230_s1 = inlined_call_operand.vmem [shape: f32[72,2048], index: 1, kind: input, shape index: {}]   ;;  %s1231_s2 = inlined_call_operand.vmem [shape: f32[8,1], index: 2, kind: input, shape index: {}]   ;;  %s1232_s3 = inlined_call_operand.vmem [shape: f32[8,2048], index: 3, kind: output, shape index: {}]  }
   0x1   :  { %s939_s14 = smov 0  }
   0x2 LB: > { %s780_s15 = sadd.s32 4294967295, %s911_s14   ;;  %s952_s16 = sadd.s32 1, %s911_s14   ;;  %s911_s14 = sphi %s939_s14, %s1235_s14   ;;  %s907_s13 = sphi %s937_s13, %s1234_s13   ;;  %s903_s12 = sphi %s935_s12, %s1233_s12  }
   0x3   : > { %s38_s17 = ssub.s32 %s911_s14, %s952_s16  ;;  %s41_s18 = sadd.s32 1, %s907_s13 }
   0x4   : > { %p39_p0 = scmp.eq.s32.totalorder %s38_s17, 0  ;;  %p48_p1 = scmp.ne.s32.totalorder %s907_s13, %s903_s12 }
   0x5   : > { %p49_p2 = scmp.eq.s32.totalorder %s911_s14, 0  ;;  %p783_p4 = scmp.ge.s32.totalorder %s911_s14, 2 }
   0x6   : > { %s961_s19 = scalar_select %p39_p0, %s907_s13, %s41_s18  }
   0x7   : > { %p50_p3 = por %p49_p2, %p48_p1  ;;  %127 = sbr.rel (%p783_p4) target bundleno = 55 (0x37), region = 24 }
   0xe   : > { %130 = sbr.rel (!%p50_p3) target bundleno = 55 (0x37), region = 28  ;;  %s132_s20 = sand.u32 (%p50_p3), 1, %s907_s13  }
   0xf   : > { %s795_s21 = sshll.u32 (%p50_p3), %s911_s14, 6  ;;  %s860_s22 = smul.u32 (%p50_p3), 576, %s132_s20 }
  0x10   : > { %s969_s25 = scalar_lea.vmem (%p50_p3), %s1230_s1, %s795_s21 }
  0x11   : > { %v150_v0 = vld [vmem:[%s969_s25] sm:$0xff] (%p50_p3)  ;;  %v152_v1 = vld [vmem:[%s969_s25 + $0x8] sm:$0xff] (%p50_p3)  ;;  %v154_v2 = vld [vmem:[%s969_s25 + $0x10] sm:$0xff] (%p50_p3)  ;;  %s977_s26 = scalar_lea.vmem (%p50_p3), [#allocation2], %s860_s22 }
  0x12   : > { %v156_v3 = vld [vmem:[%s969_s25 + $0x18] sm:$0xff] (%p50_p3)  ;;  %v158_v4 = vld [vmem:[%s969_s25 + $0x20] sm:$0xff] (%p50_p3)  ;;  %v160_v5 = vld [vmem:[%s969_s25 + $0x28] sm:$0xff] (%p50_p3)  ;;  %151 = vst [vmem:[%s977_s26] sm:$0xff] (%p50_p3), %v150_v0 }
  0x13   : > { %153 = vst [vmem:[%s977_s26 + $0x8] sm:$0xff] (%p50_p3), %v152_v1  ;;  %155 = vst [vmem:[%s977_s26 + $0x10] sm:$0xff] (%p50_p3), %v154_v2  ;;  %v162_v6 = vld [vmem:[%s969_s25 + $0x30] sm:$0xff] (%p50_p3)  ;;  %v164_v7 = vld [vmem:[%s969_s25 + $0x38] sm:$0xff] (%p50_p3) }
  0x14   : > { %157 = vst [vmem:[%s977_s26 + $0x18] sm:$0xff] (%p50_p3), %v156_v3  ;;  %159 = vst [vmem:[%s977_s26 + $0x20] sm:$0xff] (%p50_p3), %v158_v4  ;;  %v166_v8 = vld [vmem:[%s969_s25 + $0x80] sm:$0xff] (%p50_p3)  ;;  %v168_v9 = vld [vmem:[%s969_s25 + $0x88] sm:$0xff] (%p50_p3) }
  0x15   : > { %161 = vst [vmem:[%s977_s26 + $0x28] sm:$0xff] %v160_v5  ;;  %163 = vst [vmem:[%s977_s26 + $0x30] sm:$0xff] %v162_v6  ;;  %v170_v10 = vld [vmem:[%s969_s25 + $0x90] sm:$0xff]  ;;  %v172_v11 = vld [vmem:[%s969_s25 + $0x98] sm:$0xff] }
  0x16   : > { %165 = vst [vmem:[%s977_s26 + $0x38] sm:$0xff] %v164_v7  ;;  %167 = vst [vmem:[%s977_s26 + $0x40] sm:$0xff] %v166_v8  ;;  %v174_v12 = vld [vmem:[%s969_s25 + $0xa0] sm:$0xff]  ;;  %v176_v13 = vld [vmem:[%s969_s25 + $0xa8] sm:$0xff] }
  0x17   : > { %169 = vst [vmem:[%s977_s26 + $0x48] sm:$0xff] %v168_v9  ;;  %171 = vst [vmem:[%s977_s26 + $0x50] sm:$0xff] %v170_v10  ;;  %v178_v14 = vld [vmem:[%s969_s25 + $0xb0] sm:$0xff]  ;;  %v180_v15 = vld [vmem:[%s969_s25 + $0xb8] sm:$0xff] }
  0x18   : > { %173 = vst [vmem:[%s977_s26 + $0x58] sm:$0xff] %v172_v11  ;;  %175 = vst [vmem:[%s977_s26 + $0x60] sm:$0xff] %v174_v12  ;;  %v182_v16 = vld [vmem:[%s969_s25 + $0x100] sm:$0xff]  ;;  %v184_v17 = vld [vmem:[%s969_s25 + $0x108] sm:$0xff] }
  0x19   : > { %177 = vst [vmem:[%s977_s26 + $0x68] sm:$0xff] %v176_v13  ;;  %179 = vst [vmem:[%s977_s26 + $0x70] sm:$0xff] %v178_v14  ;;  %v186_v18 = vld [vmem:[%s969_s25 + $0x110] sm:$0xff]  ;;  %v188_v19 = vld [vmem:[%s969_s25 + $0x118] sm:$0xff] }
  0x1a   : > { %181 = vst [vmem:[%s977_s26 + $0x78] sm:$0xff] %v180_v15  ;;  %183 = vst [vmem:[%s977_s26 + $0x80] sm:$0xff] %v182_v16  ;;  %v190_v20 = vld [vmem:[%s969_s25 + $0x120] sm:$0xff]  ;;  %v192_v21 = vld [vmem:[%s969_s25 + $0x128] sm:$0xff] }
  0x1b   : > { %185 = vst [vmem:[%s977_s26 + $0x88] sm:$0xff] %v184_v17  ;;  %187 = vst [vmem:[%s977_s26 + $0x90] sm:$0xff] %v186_v18  ;;  %v194_v22 = vld [vmem:[%s969_s25 + $0x130] sm:$0xff]  ;;  %v196_v23 = vld [vmem:[%s969_s25 + $0x138] sm:$0xff] }
  0x1c   : > { %189 = vst [vmem:[%s977_s26 + $0x98] sm:$0xff] %v188_v19  ;;  %191 = vst [vmem:[%s977_s26 + $0xa0] sm:$0xff] %v190_v20  ;;  %v198_v24 = vld [vmem:[%s969_s25 + $0x180] sm:$0xff]  ;;  %v200_v25 = vld [vmem:[%s969_s25 + $0x188] sm:$0xff] }
  0x1d   : > { %193 = vst [vmem:[%s977_s26 + $0xa8] sm:$0xff] %v192_v21  ;;  %195 = vst [vmem:[%s977_s26 + $0xb0] sm:$0xff] %v194_v22  ;;  %v202_v26 = vld [vmem:[%s969_s25 + $0x190] sm:$0xff]  ;;  %v204_v27 = vld [vmem:[%s969_s25 + $0x198] sm:$0xff] }
  0x1e   : > { %197 = vst [vmem:[%s977_s26 + $0xb8] sm:$0xff] %v196_v23  ;;  %199 = vst [vmem:[%s977_s26 + $0xc0] sm:$0xff] %v198_v24  ;;  %v206_v28 = vld [vmem:[%s969_s25 + $0x1a0] sm:$0xff]  ;;  %v208_v29 = vld [vmem:[%s969_s25 + $0x1a8] sm:$0xff] }
  0x1f   : > { %201 = vst [vmem:[%s977_s26 + $0xc8] sm:$0xff] %v200_v25  ;;  %203 = vst [vmem:[%s977_s26 + $0xd0] sm:$0xff] %v202_v26  ;;  %v210_v30 = vld [vmem:[%s969_s25 + $0x1b0] sm:$0xff]  ;;  %v212_v31 = vld [vmem:[%s969_s25 + $0x1b8] sm:$0xff] }
  0x20   : > { %205 = vst [vmem:[%s977_s26 + $0xd8] sm:$0xff] %v204_v27  ;;  %207 = vst [vmem:[%s977_s26 + $0xe0] sm:$0xff] %v206_v28  ;;  %v214_v32 = vld [vmem:[%s969_s25 + $0x200] sm:$0xff]  ;;  %v216_v33 = vld [vmem:[%s969_s25 + $0x208] sm:$0xff] }
  0x21   : > { %209 = vst [vmem:[%s977_s26 + $0xe8] sm:$0xff] %v208_v29  ;;  %211 = vst [vmem:[%s977_s26 + $0xf0] sm:$0xff] %v210_v30  ;;  %v218_v34 = vld [vmem:[%s969_s25 + $0x210] sm:$0xff]  ;;  %v220_v35 = vld [vmem:[%s969_s25 + $0x218] sm:$0xff] }
  0x22   : > { %213 = vst [vmem:[%s977_s26 + $0xf8] sm:$0xff] %v212_v31  ;;  %215 = vst [vmem:[%s977_s26 + $0x100] sm:$0xff] %v214_v32  ;;  %v222_v36 = vld [vmem:[%s969_s25 + $0x220] sm:$0xff]  ;;  %v224_v37 = vld [vmem:[%s969_s25 + $0x228] sm:$0xff] }
  0x23   : > { %217 = vst [vmem:[%s977_s26 + $0x108] sm:$0xff] %v216_v33  ;;  %219 = vst [vmem:[%s977_s26 + $0x110] sm:$0xff] %v218_v34  ;;  %v226_v38 = vld [vmem:[%s969_s25 + $0x230] sm:$0xff]  ;;  %v228_v39 = vld [vmem:[%s969_s25 + $0x238] sm:$0xff] }
  0x24   : > { %221 = vst [vmem:[%s977_s26 + $0x118] sm:$0xff] %v220_v35  ;;  %223 = vst [vmem:[%s977_s26 + $0x120] sm:$0xff] %v222_v36  ;;  %v230_v40 = vld [vmem:[%s969_s25 + $0x280] sm:$0xff]  ;;  %v232_v41 = vld [vmem:[%s969_s25 + $0x288] sm:$0xff] }
  0x25   : > { %225 = vst [vmem:[%s977_s26 + $0x128] sm:$0xff] %v224_v37  ;;  %227 = vst [vmem:[%s977_s26 + $0x130] sm:$0xff] %v226_v38  ;;  %v234_v42 = vld [vmem:[%s969_s25 + $0x290] sm:$0xff]  ;;  %v236_v43 = vld [vmem:[%s969_s25 + $0x298] sm:$0xff] }
  0x26   : > { %229 = vst [vmem:[%s977_s26 + $0x138] sm:$0xff] %v228_v39  ;;  %231 = vst [vmem:[%s977_s26 + $0x140] sm:$0xff] %v230_v40  ;;  %v238_v44 = vld [vmem:[%s969_s25 + $0x2a0] sm:$0xff]  ;;  %v240_v45 = vld [vmem:[%s969_s25 + $0x2a8] sm:$0xff] }
  0x27   : > { %233 = vst [vmem:[%s977_s26 + $0x148] sm:$0xff] %v232_v41  ;;  %235 = vst [vmem:[%s977_s26 + $0x150] sm:$0xff] %v234_v42  ;;  %v242_v46 = vld [vmem:[%s969_s25 + $0x2b0] sm:$0xff]  ;;  %v244_v47 = vld [vmem:[%s969_s25 + $0x2b8] sm:$0xff] }
  0x28   : > { %237 = vst [vmem:[%s977_s26 + $0x158] sm:$0xff] %v236_v43  ;;  %239 = vst [vmem:[%s977_s26 + $0x160] sm:$0xff] %v238_v44  ;;  %v246_v48 = vld [vmem:[%s969_s25 + $0x300] sm:$0xff]  ;;  %v248_v49 = vld [vmem:[%s969_s25 + $0x308] sm:$0xff] }
  0x29   : > { %241 = vst [vmem:[%s977_s26 + $0x168] sm:$0xff] %v240_v45  ;;  %243 = vst [vmem:[%s977_s26 + $0x170] sm:$0xff] %v242_v46  ;;  %v250_v50 = vld [vmem:[%s969_s25 + $0x310] sm:$0xff]  ;;  %v252_v51 = vld [vmem:[%s969_s25 + $0x318] sm:$0xff] }
  0x2a   : > { %245 = vst [vmem:[%s977_s26 + $0x178] sm:$0xff] %v244_v47  ;;  %247 = vst [vmem:[%s977_s26 + $0x180] sm:$0xff] %v246_v48  ;;  %v254_v52 = vld [vmem:[%s969_s25 + $0x320] sm:$0xff]  ;;  %v256_v53 = vld [vmem:[%s969_s25 + $0x328] sm:$0xff] }
  0x2b   : > { %249 = vst [vmem:[%s977_s26 + $0x188] sm:$0xff] %v248_v49  ;;  %251 = vst [vmem:[%s977_s26 + $0x190] sm:$0xff] %v250_v50  ;;  %v258_v54 = vld [vmem:[%s969_s25 + $0x330] sm:$0xff]  ;;  %v260_v55 = vld [vmem:[%s969_s25 + $0x338] sm:$0xff] }
  0x2c   : > { %253 = vst [vmem:[%s977_s26 + $0x198] sm:$0xff] %v252_v51  ;;  %255 = vst [vmem:[%s977_s26 + $0x1a0] sm:$0xff] %v254_v52  ;;  %v262_v56 = vld [vmem:[%s969_s25 + $0x380] sm:$0xff]  ;;  %v264_v57 = vld [vmem:[%s969_s25 + $0x388] sm:$0xff] }
  0x2d   : > { %257 = vst [vmem:[%s977_s26 + $0x1a8] sm:$0xff] %v256_v53  ;;  %259 = vst [vmem:[%s977_s26 + $0x1b0] sm:$0xff] %v258_v54  ;;  %v266_v58 = vld [vmem:[%s969_s25 + $0x390] sm:$0xff]  ;;  %v268_v59 = vld [vmem:[%s969_s25 + $0x398] sm:$0xff] }
  0x2e   : > { %261 = vst [vmem:[%s977_s26 + $0x1b8] sm:$0xff] %v260_v55  ;;  %263 = vst [vmem:[%s977_s26 + $0x1c0] sm:$0xff] %v262_v56  ;;  %v270_v60 = vld [vmem:[%s969_s25 + $0x3a0] sm:$0xff]  ;;  %v272_v61 = vld [vmem:[%s969_s25 + $0x3a8] sm:$0xff] }
  0x2f   : > { %265 = vst [vmem:[%s977_s26 + $0x1c8] sm:$0xff] %v264_v57  ;;  %267 = vst [vmem:[%s977_s26 + $0x1d0] sm:$0xff] %v266_v58  ;;  %v274_v62 = vld [vmem:[%s969_s25 + $0x3b0] sm:$0xff]  ;;  %v276_v63 = vld [vmem:[%s969_s25 + $0x3b8] sm:$0xff] }
  0x30   : > { %269 = vst [vmem:[%s977_s26 + $0x1d8] sm:$0xff] %v268_v59  ;;  %271 = vst [vmem:[%s977_s26 + $0x1e0] sm:$0xff] %v270_v60  ;;  %v278_v0 = vld [vmem:[%s969_s25 + $0x400] sm:$0xff]  ;;  %v280_v1 = vld [vmem:[%s969_s25 + $0x408] sm:$0xff] }
  0x31   : > { %273 = vst [vmem:[%s977_s26 + $0x1e8] sm:$0xff] %v272_v61  ;;  %275 = vst [vmem:[%s977_s26 + $0x1f0] sm:$0xff] %v274_v62  ;;  %v282_v2 = vld [vmem:[%s969_s25 + $0x410] sm:$0xff]  ;;  %v284_v3 = vld [vmem:[%s969_s25 + $0x418] sm:$0xff] }
  0x32   : > { %277 = vst [vmem:[%s977_s26 + $0x1f8] sm:$0xff] %v276_v63  ;;  %279 = vst [vmem:[%s977_s26 + $0x200] sm:$0xff] %v278_v0  ;;  %v286_v4 = vld [vmem:[%s969_s25 + $0x420] sm:$0xff]  ;;  %v288_v5 = vld [vmem:[%s969_s25 + $0x428] sm:$0xff] }
  0x33   : > { %281 = vst [vmem:[%s977_s26 + $0x208] sm:$0xff] %v280_v1  ;;  %283 = vst [vmem:[%s977_s26 + $0x210] sm:$0xff] %v282_v2  ;;  %v290_v6 = vld [vmem:[%s969_s25 + $0x430] sm:$0xff]  ;;  %v292_v7 = vld [vmem:[%s969_s25 + $0x438] sm:$0xff] }
  0x34   : > { %285 = vst [vmem:[%s977_s26 + $0x218] sm:$0xff] %v284_v3  ;;  %287 = vst [vmem:[%s977_s26 + $0x220] sm:$0xff] %v286_v4 }
  0x35   : > { %289 = vst [vmem:[%s977_s26 + $0x228] sm:$0xff] %v288_v5  ;;  %291 = vst [vmem:[%s977_s26 + $0x230] sm:$0xff] %v290_v6 }
  0x36   : > { %293 = vst [vmem:[%s977_s26 + $0x238] sm:$0xff] %v292_v7 }
  0x37 PF: > { %p786_p5 = scmp.ge.s32.totalorder %s911_s14, 1  ;;  %p298_p6 = scmp.lt.s32.totalorder %s911_s14, 3 }
  0x39   : > { %p299_p7 = pnand %p786_p5, %p298_p6 }
  0x3a   : > { %s305_s27 = sand.u32 (!%p299_p7), 1, %s903_s12   ;;  %v408_v8 = vld [vmem:[%s1231_s2] sm:$0xff] (!%p299_p7)  ;;  %v913_v9 = vmov (!%p299_p7), 0.0   ;;  %v914_v10 = vmov (!%p299_p7), 0   ;;  %vm414_vm0 = vcmask (!%p299_p7), 588800   ;;  %s787_s7 = sshll.u32 (!%p299_p7), %s780_s15, 3 }
  0x3b   : > { %302 = sbr.rel (%p299_p7) target bundleno = 323 (0x143), region = 51  ;;  %482 = vmatprep.mubr.f32.mxu0 (!%p299_p7), %v913_v9  ;;  %553 = vmatprep.mubr.f32.mxu1 (!%p299_p7), %v913_v9  ;;  %v1169_v2 = vld [vmem:[%s1229_s0] sm:$0xff] (!%p299_p7)  ;;  %p330_p8 = scmp.lt.s32.totalorder (!%p299_p7), %s787_s7, 15 }
  0x3c   : > { %s861_s30 = smul.u32 (!%p299_p7), 576, %s305_s27  ;;  %888 = vset.pattern.permute.xlu0 (!%p299_p7), %v914_v10 }
  0x3d   : > { %411 = vperm.xlu0 (!%p299_p7), %888, %v408_v8  }
  0x3e   : > { %s1125_s4 = scalar_lea.vmem (!%p299_p7), [#allocation2], %s861_s30 }
  0x3f   : > { %v337_v11 = vld [vmem:[%s1125_s4 + $0x8] sm:$0xff] (!%p299_p7)  ;;  %v339_v13 = vld [vmem:[%s1125_s4 + $0x18] sm:$0xff] (!%p299_p7)  ;;  %v336_v16 = vld [vmem:[%s1125_s4] sm:$0xff] (!%p299_p7) }
  0x40   : > { %v345_v12 = vld [vmem:[%s1125_s4 + $0x48] sm:$0xff] (!%p299_p7)  ;;  %v347_v15 = vld [vmem:[%s1125_s4 + $0x58] sm:$0xff] (!%p299_p7)  ;;  %v344_v17 = vld [vmem:[%s1125_s4 + $0x40] sm:$0xff] (!%p299_p7) }
  0x41   : > { %v796_v14 = vpack.c.bf16 (!%p299_p7), %v345_v12, %v337_v11  ;;  %v812_v18 = vpack.c.bf16 (!%p299_p7), %v347_v15, %v339_v13  ;;  %v798_v19 = vpack.c.bf16 (!%p299_p7), %v344_v17, %v336_v16  ;;  %v338_v20 = vld [vmem:[%s1125_s4 + $0x10] sm:$0xff] (!%p299_p7)  ;;  %v353_v22 = vld [vmem:[%s1125_s4 + $0x88] sm:$0xff] (!%p299_p7)  ;;  %v355_v25 = vld [vmem:[%s1125_s4 + $0x98] sm:$0xff] (!%p299_p7) }
  0x42   : > { %v346_v21 = vld [vmem:[%s1125_s4 + $0x50] sm:$0xff]  ;;  %v361_v24 = vld [vmem:[%s1125_s4 + $0xc8] sm:$0xff]  ;;  %v363_v26 = vld [vmem:[%s1125_s4 + $0xd8] sm:$0xff]  ;;  %s1237_s7 = smov (!%p330_p8, %s787_s7), 15 }
  0x43   : > { %797 = vmatprep.subr.bf16.mxu0 %v796_v14  ;;  %v814_v23 = vpack.c.bf16 %v346_v21, %v338_v20  ;;  %813 = vmatprep.subr.bf16.mxu1 %v812_v18  ;;  %v800_v27 = vpack.c.bf16 %v361_v24, %v353_v22  ;;  %v816_v28 = vpack.c.bf16 %v363_v26, %v355_v25  ;;  %v352_v29 = vld [vmem:[%s1125_s4 + $0x80] sm:$0xff]  ;;  %v354_v31 = vld [vmem:[%s1125_s4 + $0x90] sm:$0xff]  ;;  %v369_v34 = vld [vmem:[%s1125_s4 + $0x108] sm:$0xff]  ;;  %s788_s8 = sshll.u32 %s1237_s7, 3 }
  0x44   : > { %799 = vmatpush1.bf16.msra.mxu0 %v798_v19  ;;  %v360_v30 = vld [vmem:[%s1125_s4 + $0xc0] sm:$0xff]  ;;  %v362_v33 = vld [vmem:[%s1125_s4 + $0xd0] sm:$0xff]  ;;  %v377_v35 = vld [vmem:[%s1125_s4 + $0x148] sm:$0xff]  ;;  %s333_s11 = scalar_lea.vmem %s1232_s3, %s788_s8 }
  0x45   : > { %815 = vmatpush1.bf16.msra.mxu1 %v814_v23  ;;  %v802_v32 = vpack.c.bf16 %v360_v30, %v352_v29  ;;  %801 = vmatprep.subr.bf16.mxu0 %v800_v27  ;;  %v818_v36 = vpack.c.bf16 %v362_v33, %v354_v31  ;;  %v804_v37 = vpack.c.bf16 %v377_v35, %v369_v34  ;;  %v371_v38 = vld [vmem:[%s1125_s4 + $0x118] sm:$0xff]  ;;  %v368_v40 = vld [vmem:[%s1125_s4 + $0x100] sm:$0xff]  ;;  %v370_v43 = vld [vmem:[%s1125_s4 + $0x110] sm:$0xff] }
  0x46   : > { %817 = vmatprep.subr.bf16.mxu1 %v816_v28  ;;  %v379_v39 = vld [vmem:[%s1125_s4 + $0x158] sm:$0xff]  ;;  %v376_v42 = vld [vmem:[%s1125_s4 + $0x140] sm:$0xff]  ;;  %v378_v44 = vld [vmem:[%s1125_s4 + $0x150] sm:$0xff] }
  0x47   : > { %v820_v41 = vpack.c.bf16 %v379_v39, %v371_v38  ;;  %v806_v45 = vpack.c.bf16 %v376_v42, %v368_v40  ;;  %v385_v46 = vld [vmem:[%s1125_s4 + $0x188] sm:$0xff]  ;;  %v387_v48 = vld [vmem:[%s1125_s4 + $0x198] sm:$0xff]  ;;  %v822_v49 = vpack.c.bf16 %v378_v44, %v370_v43  ;;  %v384_v52 = vld [vmem:[%s1125_s4 + $0x180] sm:$0xff] }
  0x48   : > { %803 = vmatpush1.bf16.msra.mxu0 %v802_v32  ;;  %v393_v47 = vld [vmem:[%s1125_s4 + $0x1c8] sm:$0xff]  ;;  %v395_v51 = vld [vmem:[%s1125_s4 + $0x1d8] sm:$0xff]  ;;  %v392_v53 = vld [vmem:[%s1125_s4 + $0x1c0] sm:$0xff] }
  0x49   : > { %819 = vmatpush1.bf16.msra.mxu1 %v818_v36  ;;  %805 = vmatprep.subr.bf16.mxu0 %v804_v37  ;;  %v808_v50 = vpack.c.bf16 %v393_v47, %v385_v46  ;;  %v824_v54 = vpack.c.bf16 %v395_v51, %v387_v48  ;;  %v386_v55 = vld [vmem:[%s1125_s4 + $0x190] sm:$0xff]  ;;  %v810_v57 = vpack.c.bf16 %v392_v53, %v384_v52  ;;  %v401_v59 = vld [vmem:[%s1125_s4 + $0x208] sm:$0xff]  ;;  %v403_v60 = vld [vmem:[%s1125_s4 + $0x218] sm:$0xff] }
  0x4a   : > { %821 = vmatprep.subr.bf16.mxu1 %v820_v41  ;;  %v394_v56 = vld [vmem:[%s1125_s4 + $0x1d0] sm:$0xff]  ;;  %v341_v61 = vld [vmem:[%s1125_s4 + $0x28] sm:$0xff]  ;;  %v400_v62 = vld [vmem:[%s1125_s4 + $0x200] sm:$0xff] }
  0x4b   : > { %v826_v58 = vpack.c.bf16 %v394_v56, %v386_v55  ;;  %v349_v63 = vld [vmem:[%s1125_s4 + $0x68] sm:$0xff]  ;;  %v343_v0 = vld [vmem:[%s1125_s4 + $0x38] sm:$0xff]  ;;  %v340_v3 = vld [vmem:[%s1125_s4 + $0x20] sm:$0xff] }
  0x4c   : > { %807 = vmatpush1.bf16.msra.mxu0 %v806_v45  ;;  %v351_v1 = vld [vmem:[%s1125_s4 + $0x78] sm:$0xff]  ;;  %v348_v4 = vld [vmem:[%s1125_s4 + $0x60] sm:$0xff]  ;;  %v342_v5 = vld [vmem:[%s1125_s4 + $0x30] sm:$0xff]  ;;  %v828_v11 = vpack.c.bf16 %v349_v63, %v341_v61 }
  0x4d   : > { %823 = vmatpush1.bf16.msra.mxu1 %v822_v49  ;;  %809 = vmatprep.subr.bf16.mxu0 %v808_v50  ;;  %v350_v6 = vld [vmem:[%s1125_s4 + $0x70] sm:$0xff]  ;;  %v357_v7 = vld [vmem:[%s1125_s4 + $0xa8] sm:$0xff]  ;;  %v359_v12 = vld [vmem:[%s1125_s4 + $0xb8] sm:$0xff]  ;;  %v844_v14 = vpack.c.bf16 %v351_v1, %v343_v0  ;;  %v830_v15 = vpack.c.bf16 %v348_v4, %v340_v3 }
  0x4e   : > { %825 = vmatprep.subr.bf16.mxu1 %v824_v54  ;;  %v365_v8 = vld [vmem:[%s1125_s4 + $0xe8] sm:$0xff]  ;;  %v402_v10 = vld [vmem:[%s1125_s4 + $0x210] sm:$0xff]  ;;  %v367_v13 = vld [vmem:[%s1125_s4 + $0xf8] sm:$0xff]  ;;  %v846_v16 = vpack.c.bf16 %v350_v6, %v342_v5 }
  0x4f   : > { %v832_v17 = vpack.c.bf16 %v365_v8, %v357_v7  ;;  %v356_v18 = vld [vmem:[%s1125_s4 + $0xa0] sm:$0xff]  ;;  %v358_v20 = vld [vmem:[%s1125_s4 + $0xb0] sm:$0xff]  ;;  %v848_v21 = vpack.c.bf16 %v367_v13, %v359_v12  ;;  %v373_v23 = vld [vmem:[%s1125_s4 + $0x128] sm:$0xff] }
  0x50   : > { %811 = vmatpush1.bf16.msra.mxu0 %v810_v57  ;;  %v364_v19 = vld [vmem:[%s1125_s4 + $0xe0] sm:$0xff]  ;;  %v366_v22 = vld [vmem:[%s1125_s4 + $0xf0] sm:$0xff]  ;;  %v381_v24 = vld [vmem:[%s1125_s4 + $0x168] sm:$0xff] }
  0x51   : > { %827 = vmatpush1.bf16.msra.mxu1 %v826_v58  ;;  %434 = vmatprep.subr.mxu0 %v401_v59  ;;  %v375_v25 = vld [vmem:[%s1125_s4 + $0x138] sm:$0xff]  ;;  %v834_v27 = vpack.c.bf16 %v364_v19, %v356_v18  ;;  %v850_v28 = vpack.c.bf16 %v366_v22, %v358_v20  ;;  %v836_v29 = vpack.c.bf16 %v381_v24, %v373_v23  ;;  %v372_v30 = vld [vmem:[%s1125_s4 + $0x120] sm:$0xff]  ;;  %v374_v32 = vld [vmem:[%s1125_s4 + $0x130] sm:$0xff] }
  0x52   : > { %505 = vmatprep.subr.mxu1 %v403_v60  ;;  %v383_v26 = vld [vmem:[%s1125_s4 + $0x178] sm:$0xff]  ;;  %v380_v31 = vld [vmem:[%s1125_s4 + $0x160] sm:$0xff]  ;;  %v382_v34 = vld [vmem:[%s1125_s4 + $0x170] sm:$0xff] }
  0x53   : > { %v852_v33 = vpack.c.bf16 %v383_v26, %v375_v25  ;;  %v389_v35 = vld [vmem:[%s1125_s4 + $0x1a8] sm:$0xff]  ;;  %v391_v37 = vld [vmem:[%s1125_s4 + $0x1b8] sm:$0xff]  ;;  %v838_v39 = vpack.c.bf16 %v380_v31, %v372_v30  ;;  %v854_v40 = vpack.c.bf16 %v382_v34, %v374_v32  ;;  %v388_v42 = vld [vmem:[%s1125_s4 + $0x1a0] sm:$0xff] }
  0x54   : > { %435 = vmatpush1.msra.mxu0 %v400_v62  ;;  %v397_v36 = vld [vmem:[%s1125_s4 + $0x1e8] sm:$0xff]  ;;  %v399_v38 = vld [vmem:[%s1125_s4 + $0x1f8] sm:$0xff]  ;;  %v396_v43 = vld [vmem:[%s1125_s4 + $0x1e0] sm:$0xff] }
  0x55   : > { %506 = vmatpush1.msra.mxu1 %v402_v10  ;;  %789 = vmatmul.mubr.msk.f32.vlgmr.msra.gmra.mrb[0].mxu0 %vm414_vm0, %v1169_v2  ;;  %v840_v41 = vpack.c.bf16 %v397_v36, %v389_v35  ;;  %v856_v44 = vpack.c.bf16 %v399_v38, %v391_v37  ;;  %v390_v45 = vld [vmem:[%s1125_s4 + $0x1b0] sm:$0xff]  ;;  %v842_v47 = vpack.c.bf16 %v396_v43, %v388_v42  ;;  %v405_v48 = vld [vmem:[%s1125_s4 + $0x228] sm:$0xff]  ;;  %v407_v49 = vld [vmem:[%s1125_s4 + $0x238] sm:$0xff] }
  0x56   : > { %790 = vmatmul.mubr.msk.f32.vlgmr.msra.gmra.mrb[0].mxu1 %vm414_vm0, %v1169_v2  ;;  %829 = vmatprep.subr.bf16.mxu0 %v828_v11  ;;  %v398_v46 = vld [vmem:[%s1125_s4 + $0x1f0] sm:$0xff]  ;;  %v404_v50 = vld [vmem:[%s1125_s4 + $0x220] sm:$0xff] }
  0x57   : > { %845 = vmatprep.subr.bf16.mxu1 %v844_v14  ;;  %831 = vmatpush1.bf16.msra.mxu0 %v830_v15  ;;  %v406_v51 = vld [vmem:[%s1125_s4 + $0x230] sm:$0xff] }
  0x58   : > { %847 = vmatpush1.bf16.msra.mxu1 %v846_v16  ;;  %833 = vmatprep.subr.bf16.mxu0 %v832_v17 }
  0x59   : > { %849 = vmatprep.subr.bf16.mxu1 %v848_v21  ;;  %624 = vmatprep.mubr.f32.mxu0 %v913_v9 }
  0x5a   : > { %695 = vmatprep.mubr.f32.mxu1 %v913_v9  ;;  %v858_v9 = vpack.c.bf16 %v398_v46, %v390_v45 }
  0x5b   : > { %835 = vmatpush1.bf16.msra.mxu0 %v834_v27 }
  0x5c   : > { %851 = vmatpush1.bf16.msra.mxu1 %v850_v28  ;;  %837 = vmatprep.subr.bf16.mxu0 %v836_v29 }
  0x5d   : > { %853 = vmatprep.subr.bf16.mxu1 %v852_v33 }
  0x5f   : > { %839 = vmatpush1.bf16.msra.mxu0 %v838_v39 }
  0x60   : > { %855 = vmatpush1.bf16.msra.mxu1 %v854_v40  ;;  %841 = vmatprep.subr.bf16.mxu0 %v840_v41 }
  0x61   : > { %857 = vmatprep.subr.bf16.mxu1 %v856_v44 }
  0x63   : > { %843 = vmatpush1.bf16.msra.mxu0 %v842_v47 }
  0x64   : > { %859 = vmatpush1.bf16.msra.mxu1 %v858_v9  ;;  %576 = vmatprep.subr.mxu0 %v405_v48 }
  0x65   : > { %647 = vmatprep.subr.mxu1 %v407_v49 }
  0x67   : > { %577 = vmatpush1.msra.mxu0 %v404_v50 }
  0x68   : > { %648 = vmatpush1.msra.mxu1 %v406_v51  ;;  %791 = vmatmul.mubr.msk.f32.vlgmr.msra.gmra.mrb[2].mxu0 %vm414_vm0, %v1169_v2 }
  0x69   : > { %792 = vmatmul.mubr.msk.f32.vlgmr.msra.gmra.mrb[2].mxu1 %vm414_vm0, %v1169_v2 }
  0xbc   : > { %v412_v52 = vpop.permute.xlu0 %411 }
 0x128   : > { %v484_v53 = vpop.f32.mrb[0].mxu0 }
 0x129   : > { %v555_v54 = vpop.f32.mrb[0].mxu1  ;;  %v485_v55 = vadd.f32 %v484_v53, %v412_v52  ;;  %v486_v56 = vpop.f32.mrb[1].mxu0 }
 0x12a   : > { %v556_v57 = vadd.f32 %v555_v54, %v412_v52  ;;  %v487_v58 = vadd.f32 %v486_v56, %v412_v52  ;;  %v557_v59 = vpop.f32.mrb[1].mxu1 }
 0x12b   : > { %v702_v60 = vmax.f32 %v485_v55, 0.0  ;;  %v558_v61 = vadd.f32 %v557_v59, %v412_v52 }
 0x12c   : > { %v704_v62 = vmax.f32 %v556_v57, 0.0  ;;  %v703_v63 = vmax.f32 %v487_v58, 0.0 }
 0x12d   : > { %710 = vst [vmem:[%s333_s11] sm:$0xff] %v702_v60  ;;  %v705_v0 = vmax.f32 %v558_v61, 0.0 }
 0x12e   : > { %712 = vst [vmem:[%s333_s11 + $0x10] sm:$0xff] %v704_v62  ;;  %711 = vst [vmem:[%s333_s11 + $0x8] sm:$0xff] %v703_v63 }
 0x12f   : > { %713 = vst [vmem:[%s333_s11 + $0x18] sm:$0xff] %v705_v0 }
 0x13b   : > { %v626_v1 = vpop.f32.mrb[2].mxu0 }
 0x13c   : > { %v627_v2 = vadd.f32 %v626_v1, %v412_v52  ;;  %v697_v3 = vpop.f32.mrb[2].mxu1  ;;  %v628_v4 = vpop.f32.mrb[3].mxu0 }
 0x13d   : > { %v698_v5 = vadd.f32 %v697_v3, %v412_v52  ;;  %v629_v6 = vadd.f32 %v628_v4, %v412_v52  ;;  %v699_v7 = vpop.f32.mrb[3].mxu1 }
 0x13e   : > { %v706_v8 = vmax.f32 %v627_v2, 0.0  ;;  %v700_v10 = vadd.f32 %v699_v7, %v412_v52 }
 0x13f   : > { %v708_v11 = vmax.f32 %v698_v5, 0.0  ;;  %v707_v12 = vmax.f32 %v629_v6, 0.0 }
 0x140   : > { %714 = vst [vmem:[%s333_s11 + $0x20] sm:$0xff] %v706_v8  ;;  %v709_v13 = vmax.f32 %v700_v10, 0.0 }
 0x141   : > { %716 = vst [vmem:[%s333_s11 + $0x30] sm:$0xff] %v708_v11  ;;  %715 = vst [vmem:[%s333_s11 + $0x28] sm:$0xff] %v707_v12 }
 0x142   : > { %717 = vst [vmem:[%s333_s11 + $0x38] sm:$0xff] %v709_v13 }
 0x143 PF: > { %p10_p9 = scmp.ge.s32.totalorder %s952_s16, 4   ;;  %s1233_s12 = smov %s907_s13 }
 0x144   : > { %s1234_s13 = smov %s961_s19  ;;  %s1235_s14 = smov %s952_s16 }
 0x145   :  { %12 = sbr.rel (!%p10_p9) target bundleno = 2 (0x2), region = 90 }

// kernel: discriminator_forward.8
= control target key start
LH: loop header
LB: loop body
LE: loop exit
PB: predicated region body
PF: predicated region fallthrough
CT: control target
= control target key end

     0   :  { %s552_s12 = smov 0   ;;  %s554_s13 = smov 0   ;;  %s668_s0 = inlined_call_operand.vmem [shape: f32[16,72], index: 0, kind: input, shape index: {}]   ;;  %s669_s1 = inlined_call_operand.vmem [shape: f32[72,512], index: 1, kind: input, shape index: {}]   ;;  %s670_s2 = inlined_call_operand.vmem [shape: f32[16,1], index: 2, kind: input, shape index: {}]   ;;  %s671_s3 = inlined_call_operand.vmem [shape: f32[16,512], index: 3, kind: output, shape index: {}]  }
   0x1   :  { %s556_s14 = smov 0  }
   0x2 LB: > { %s434_s15 = sadd.s32 4294967295, %s528_s14   ;;  %s569_s16 = sadd.s32 1, %s528_s14   ;;  %s528_s14 = sphi %s556_s14, %s675_s14   ;;  %s524_s13 = sphi %s554_s13, %s674_s13   ;;  %s520_s12 = sphi %s552_s12, %s673_s12  }
   0x3   : > { %s38_s17 = ssub.s32 %s528_s14, %s569_s16  ;;  %s41_s18 = sadd.s32 1, %s524_s13 }
   0x4   : > { %p39_p0 = scmp.eq.s32.totalorder %s38_s17, 0  ;;  %p48_p1 = scmp.ne.s32.totalorder %s524_s13, %s520_s12 }
   0x5   : > { %p49_p2 = scmp.eq.s32.totalorder %s528_s14, 0  ;;  %p99_p3 = scmp.eq.s32.totalorder %s434_s15, 1 }
   0x6   : > { %s580_s19 = scalar_select %p39_p0, %s524_s13, %s41_s18  }
   0x7   : > { %p50_p4 = por %p49_p2, %p48_p1  ;;  %p582_p5 = por %p99_p3, %p48_p1 }
   0x8   : > { %p437_p6 = scmp.ge.s32.totalorder %s528_s14, 2 }
   0xa   : > { %127 = sbr.rel (%p437_p6) target bundleno = 30 (0x1e), region = 24 }
  0x11   : > { %130 = sbr.rel (!%p50_p4) target bundleno = 30 (0x1e), region = 28  ;;  %s132_s21 = sand.u32 (%p50_p4), 1, %s524_s13  }
  0x12   : > { %s449_s22 = sshll.u32 (%p50_p4), %s528_s14, 4  ;;  %s477_s23 = smul.u32 (%p50_p4), 144, %s132_s21 }
  0x13   : > { %s592_s26 = scalar_lea.vmem (%p50_p4), %s669_s1, %s449_s22 }
  0x14   : > { %v150_v0 = vld [vmem:[%s592_s26] sm:$0xff] (%p50_p4)  ;;  %v152_v1 = vld [vmem:[%s592_s26 + $0x8] sm:$0xff] (%p50_p4)  ;;  %s134_s27 = scalar_lea.vmem (%p50_p4), [#allocation2], %s477_s23 }
  0x15   : > { %v154_v2 = vld [vmem:[%s592_s26 + $0x20] sm:$0xff] (%p50_p4)  ;;  %v156_v3 = vld [vmem:[%s592_s26 + $0x28] sm:$0xff] (%p50_p4)  ;;  %151 = vst [vmem:[%s134_s27] sm:$0xff] (%p50_p4), %v150_v0  ;;  %153 = vst [vmem:[%s134_s27 + $0x8] sm:$0xff] (%p50_p4), %v152_v1 }
  0x16   : > { %v158_v4 = vld [vmem:[%s592_s26 + $0x40] sm:$0xff] (%p50_p4)  ;;  %v160_v5 = vld [vmem:[%s592_s26 + $0x48] sm:$0xff] (%p50_p4)  ;;  %155 = vst [vmem:[%s134_s27 + $0x10] sm:$0xff] (%p50_p4), %v154_v2  ;;  %157 = vst [vmem:[%s134_s27 + $0x18] sm:$0xff] (%p50_p4), %v156_v3 }
  0x17   : > { %159 = vst [vmem:[%s134_s27 + $0x20] sm:$0xff] (%p50_p4), %v158_v4  ;;  %161 = vst [vmem:[%s134_s27 + $0x28] sm:$0xff] (%p50_p4), %v160_v5  ;;  %v162_v6 = vld [vmem:[%s592_s26 + $0x60] sm:$0xff] (%p50_p4)  ;;  %v164_v7 = vld [vmem:[%s592_s26 + $0x68] sm:$0xff] (%p50_p4) }
  0x18   : > { %v166_v8 = vld [vmem:[%s592_s26 + $0x80] sm:$0xff]  ;;  %163 = vst [vmem:[%s134_s27 + $0x30] sm:$0xff] %v162_v6  ;;  %165 = vst [vmem:[%s134_s27 + $0x38] sm:$0xff] %v164_v7  ;;  %v168_v9 = vld [vmem:[%s592_s26 + $0x88] sm:$0xff] }
  0x19   : > { %167 = vst [vmem:[%s134_s27 + $0x40] sm:$0xff] %v166_v8  ;;  %v170_v10 = vld [vmem:[%s592_s26 + $0xa0] sm:$0xff]  ;;  %v172_v11 = vld [vmem:[%s592_s26 + $0xa8] sm:$0xff]  ;;  %169 = vst [vmem:[%s134_s27 + $0x48] sm:$0xff] %v168_v9 }
  0x1a   : > { %171 = vst [vmem:[%s134_s27 + $0x50] sm:$0xff] %v170_v10  ;;  %173 = vst [vmem:[%s134_s27 + $0x58] sm:$0xff] %v172_v11  ;;  %v174_v12 = vld [vmem:[%s592_s26 + $0xc0] sm:$0xff]  ;;  %v176_v13 = vld [vmem:[%s592_s26 + $0xc8] sm:$0xff] }
  0x1b   : > { %v178_v14 = vld [vmem:[%s592_s26 + $0xe0] sm:$0xff]  ;;  %175 = vst [vmem:[%s134_s27 + $0x60] sm:$0xff] %v174_v12  ;;  %177 = vst [vmem:[%s134_s27 + $0x68] sm:$0xff] %v176_v13  ;;  %v180_v15 = vld [vmem:[%s592_s26 + $0xe8] sm:$0xff] }
  0x1c   : > { %179 = vst [vmem:[%s134_s27 + $0x70] sm:$0xff] %v178_v14  ;;  %v182_v16 = vld [vmem:[%s592_s26 + $0x100] sm:$0xff]  ;;  %v184_v17 = vld [vmem:[%s592_s26 + $0x108] sm:$0xff]  ;;  %181 = vst [vmem:[%s134_s27 + $0x78] sm:$0xff] %v180_v15 }
  0x1d   : > { %183 = vst [vmem:[%s134_s27 + $0x80] sm:$0xff] %v182_v16  ;;  %185 = vst [vmem:[%s134_s27 + $0x88] sm:$0xff] %v184_v17 }
  0x1e PF: > { %p440_p7 = scmp.ge.s32.totalorder %s528_s14, 1  ;;  %p190_p8 = scmp.lt.s32.totalorder %s528_s14, 3 }
  0x20   : > { %p191_p9 = pnand %p440_p7, %p190_p8 }
  0x21   : > { %s197_s28 = sand.u32 (!%p191_p9), 1, %s520_s12   ;;  %v530_v18 = vmov (!%p191_p9), 0.0   ;;  %v241_v19 = vld [vmem:[%s670_s2] sm:$0xff] (!%p191_p9)  ;;  %v531_v20 = vmov (!%p191_p9), 0   ;;  %v242_v34 = vld [vmem:[%s670_s2 + $0x8] sm:$0xff] (!%p191_p9)  ;;  %vm253_vm0 = vcmask (!%p191_p9), 588800  }
  0x22   : > { %194 = sbr.rel (%p191_p9) target bundleno = 285 (0x11d), region = 51  ;;  %324 = vmatprep.mubr.f32.mxu0 (!%p191_p9), %v530_v18  ;;  %330 = vmatprep.mubr.f32.mxu1 (!%p191_p9), %v530_v18  ;;  %v221_v48 = vld [vmem:[%s668_s0] sm:$0xff] (!%p191_p9)  ;;  %v222_v49 = vld [vmem:[%s668_s0 + $0x8] sm:$0xff] (!%p191_p9)  ;;  %s441_s17 = sshll.u32 (!%p191_p9), %s197_s28, 5 }
  0x23   : > { %s478_s29 = smul.u32 (!%p191_p9), 144, %s197_s28  ;;  %505 = vset.pattern.permute.xlu0 (!%p191_p9), %v531_v20  ;;  %s218_s18 = scalar_lea.vmem (!%p191_p9), [#allocation3], %s441_s17 }
  0x24   : > { %245 = vperm.xlu0 (!%p191_p9), %505, %v241_v19  }
  0x25   : > { %s620_s5 = scalar_lea.vmem (!%p191_p9), [#allocation2], %s478_s29 }
  0x26   : > { %v224_v21 = vld [vmem:[%s620_s5 + $0x8] sm:$0xff] (!%p191_p9)  ;;  %v226_v22 = vld [vmem:[%s620_s5 + $0x18] sm:$0xff] (!%p191_p9)  ;;  %v223_v23 = vld [vmem:[%s620_s5] sm:$0xff] (!%p191_p9) }
  0x27   : > { %v451_v24 = vpack.c.bf16 (!%p191_p9), %v226_v22, %v224_v21  ;;  %v225_v25 = vld [vmem:[%s620_s5 + $0x10] sm:$0xff] (!%p191_p9)  ;;  %v228_v26 = vld [vmem:[%s620_s5 + $0x28] sm:$0xff] (!%p191_p9)  ;;  %v230_v27 = vld [vmem:[%s620_s5 + $0x38] sm:$0xff] (!%p191_p9) }
  0x28   : > { %v453_v28 = vpack.c.bf16 (!%p191_p9), %v225_v25, %v223_v23  ;;  %v455_v29 = vpack.c.bf16 (!%p191_p9), %v230_v27, %v228_v26  ;;  %v227_v30 = vld [vmem:[%s620_s5 + $0x20] sm:$0xff] (!%p191_p9)  ;;  %v229_v31 = vld [vmem:[%s620_s5 + $0x30] sm:$0xff] (!%p191_p9)  ;;  %v232_v32 = vld [vmem:[%s620_s5 + $0x48] sm:$0xff] (!%p191_p9)  ;;  %250 = vperm.xlu0 (!%p191_p9), %505, %v242_v34  }
  0x29   : > { %452 = vmatprep.subr.bf16.mxu0 %v451_v24  ;;  %467 = vmatprep.subr.bf16.mxu1 %v451_v24  ;;  %v234_v33 = vld [vmem:[%s620_s5 + $0x58] sm:$0xff]  ;;  %v457_v35 = vpack.c.bf16 %v229_v31, %v227_v30  ;;  %v231_v37 = vld [vmem:[%s620_s5 + $0x40] sm:$0xff]  ;;  %v233_v38 = vld [vmem:[%s620_s5 + $0x50] sm:$0xff]  ;;  %s450_s12 = sshll.u32 (%p582_p5), %s434_s15, 4 }
  0x2a   : > { %454 = vmatpush1.bf16.msra.mxu0 %v453_v28  ;;  %472 = vmatpush1.bf16.msra.mxu1 %v453_v28  ;;  %v459_v36 = vpack.c.bf16 %v234_v33, %v232_v32  ;;  %v236_v39 = vld [vmem:[%s620_s5 + $0x68] sm:$0xff]  ;;  %v238_v40 = vld [vmem:[%s620_s5 + $0x78] sm:$0xff]  ;;  %v461_v41 = vpack.c.bf16 %v233_v38, %v231_v37  ;;  %v235_v43 = vld [vmem:[%s620_s5 + $0x60] sm:$0xff]  ;;  %s354_s23 = scalar_lea.vmem (%p582_p5), %s671_s3, %s450_s12 }
  0x2b   : > { %456 = vmatprep.subr.bf16.mxu0 %v455_v29  ;;  %468 = vmatprep.subr.bf16.mxu1 %v455_v29  ;;  %v463_v42 = vpack.c.bf16 %v238_v40, %v236_v39  ;;  %v237_v44 = vld [vmem:[%s620_s5 + $0x70] sm:$0xff]  ;;  %v240_v46 = vld [vmem:[%s620_s5 + $0x88] sm:$0xff]  ;;  %v239_v47 = vld [vmem:[%s620_s5 + $0x80] sm:$0xff] }
  0x2c   : > { %v465_v45 = vpack.c.bf16 %v237_v44, %v235_v43 }
  0x2e   : > { %458 = vmatpush1.bf16.msra.mxu0 %v457_v35  ;;  %473 = vmatpush1.bf16.msra.mxu1 %v457_v35 }
  0x2f   : > { %460 = vmatprep.subr.bf16.mxu0 %v459_v36  ;;  %469 = vmatprep.subr.bf16.mxu1 %v459_v36 }
  0x32   : > { %462 = vmatpush1.bf16.msra.mxu0 %v461_v41  ;;  %474 = vmatpush1.bf16.msra.mxu1 %v461_v41 }
  0x33   : > { %464 = vmatprep.subr.bf16.mxu0 %v463_v42  ;;  %470 = vmatprep.subr.bf16.mxu1 %v463_v42 }
  0x36   : > { %466 = vmatpush1.bf16.msra.mxu0 %v465_v45  ;;  %475 = vmatpush1.bf16.msra.mxu1 %v465_v45 }
  0x37   : > { %276 = vmatprep.subr.mxu0 %v240_v46  ;;  %471 = vmatprep.subr.mxu1 %v240_v46 }
  0x3a   : > { %277 = vmatpush1.msra.mxu0 %v239_v47  ;;  %476 = vmatpush1.msra.mxu1 %v239_v47 }
  0x3b   : > { %442 = vmatmul.mubr.msk.f32.vlgmr.msra.gmra.mrb[0].mxu0 %vm253_vm0, %v221_v48  ;;  %443 = vmatmul.mubr.msk.f32.vlgmr.msra.gmra.mrb[0].mxu1 %vm253_vm0, %v222_v49 }
  0xa3   : > { %v246_v50 = vpop.permute.xlu0 %245 }
  0xa7   : > { %v251_v51 = vpop.permute.xlu0 %250 }
 0x10e   : > { %v326_v52 = vpop.f32.mrb[0].mxu0  ;;  %v332_v53 = vpop.f32.mrb[0].mxu1  ;;  %351 = sbr.rel (!%p582_p5) target bundleno = 285 (0x11d), region = 59 }
 0x10f   : > { %v327_v54 = vadd.f32 %v326_v52, %v246_v50  ;;  %v333_v55 = vadd.f32 %v332_v53, %v251_v51  ;;  %v328_v56 = vpop.f32.mrb[1].mxu0  ;;  %v334_v57 = vpop.f32.mrb[1].mxu1 }
 0x110   : > { %v329_v58 = vadd.f32 %v328_v56, %v246_v50  ;;  %v335_v59 = vadd.f32 %v334_v57, %v251_v51 }
 0x111   : > { %v337_v60 = vmax.f32 %v327_v54, 0.0  ;;  %v339_v61 = vmax.f32 %v333_v55, 0.0 }
 0x112   : > { %v338_v62 = vmax.f32 %v329_v58, 0.0  ;;  %v340_v63 = vmax.f32 %v335_v59, 0.0 }
 0x113   : > { %341 = vst [vmem:[%s218_s18] sm:$0xff] %v337_v60  ;;  %343 = vst [vmem:[%s218_s18 + $0x10] sm:$0xff] %v339_v61 }
 0x114   : > { %342 = vst [vmem:[%s218_s18 + $0x8] sm:$0xff] %v338_v62  ;;  %344 = vst [vmem:[%s218_s18 + $0x18] sm:$0xff] %v340_v63 }
 0x11a   : > { %v367_v0 = vld [vmem:[%s218_s18] sm:$0xff]  ;;  %v371_v2 = vld [vmem:[%s218_s18 + $0x10] sm:$0xff] }
 0x11b   : > { %v369_v1 = vld [vmem:[%s218_s18 + $0x8] sm:$0xff]  ;;  %v373_v3 = vld [vmem:[%s218_s18 + $0x18] sm:$0xff]  ;;  %368 = vst [vmem:[%s354_s23] sm:$0xff] %v367_v0  ;;  %372 = vst [vmem:[%s354_s23 + $0x20] sm:$0xff] %v371_v2 }
 0x11c   : > { %370 = vst [vmem:[%s354_s23 + $0x8] sm:$0xff] %v369_v1  ;;  %374 = vst [vmem:[%s354_s23 + $0x28] sm:$0xff] %v373_v3 }
 0x11d PF: > { %p10_p10 = scmp.ge.s32.totalorder %s569_s16, 4   ;;  %s673_s12 = smov %s524_s13 }
 0x11e   : > { %s674_s13 = smov %s580_s19  ;;  %s675_s14 = smov %s569_s16 }
 0x11f   :  { %12 = sbr.rel (!%p10_p10) target bundleno = 2 (0x2), region = 113 }

// kernel: discriminator_forward.9
= control target key start
LH: loop header
LB: loop body
LE: loop exit
PB: predicated region body
PF: predicated region fallthrough
CT: control target
= control target key end

     0   :  { %v227_v0 = vmov 0.0|0.0   ;;  %v228_v6 = vmov 0   ;;  %vm64_vm0 = vcmask 130048   ;;  %s373_s1 = inlined_call_operand.vmem [shape: f32[144,128], index: 1, kind: input, shape index: {}]   ;;  %s374_s0 = inlined_call_operand.vmem [shape: f32[32,144], index: 0, kind: input, shape index: {}]   ;;  %s375_s2 = inlined_call_operand.vmem [shape: f32[32,1], index: 2, kind: input, shape index: {}]   ;;  %s376_s3 = inlined_call_operand.vmem [shape: f32[32,128], index: 3, kind: output, shape index: {}]  }
   0x1   :  { %178 = vmatprep.subr.bf16.mxu0 %v227_v0  ;;  %205 = vmatprep.subr.bf16.mxu1 %v227_v0  ;;  %v22_v1 = vld [vmem:[%s373_s1] sm:$0xff]  ;;  %v23_v2 = vld [vmem:[%s373_s1 + $0x8] sm:$0xff]  ;;  %v24_v3 = vld [vmem:[%s373_s1 + $0x10] sm:$0xff] }
   0x2   :  { %v179_v4 = vpack.c.bf16 %v23_v2, %v22_v1  ;;  %v25_v5 = vld [vmem:[%s373_s1 + $0x18] sm:$0xff]  ;;  %226 = vset.pattern.permute.xlu1 %v228_v6  ;;  %225 = vset.pattern.permute.xlu0 %v228_v6  ;;  %v26_v8 = vld [vmem:[%s373_s1 + $0x20] sm:$0xff]  ;;  %v27_v9 = vld [vmem:[%s373_s1 + $0x28] sm:$0xff] }
   0x3   :  { %v182_v7 = vpack.c.bf16 %v25_v5, %v24_v3  ;;  %v15_v10 = vld [vmem:[%s374_s0 + $0x8] sm:$0xff]  ;;  %v185_v12 = vpack.c.bf16 %v27_v9, %v26_v8  ;;  %v28_v13 = vld [vmem:[%s373_s1 + $0x30] sm:$0xff]  ;;  %v29_v14 = vld [vmem:[%s373_s1 + $0x38] sm:$0xff] }
   0x4   :  { %180 = vmatpush1.bf16.msra.mxu0 %v179_v4  ;;  %214 = vmatpush1.bf16.msra.mxu1 %v179_v4  ;;  %v19_v11 = vld [vmem:[%s374_s0 + $0x28] sm:$0xff]  ;;  %v42_v15 = vld [vmem:[%s375_s2 + $0x10] sm:$0xff]  ;;  %v40_v16 = vld [vmem:[%s375_s2] sm:$0xff]  ;;  %v188_v17 = vpack.c.bf16 %v29_v14, %v28_v13 }
   0x5   :  { %181 = vmatprep.subr.bf16.mxu0 %v227_v0  ;;  %206 = vmatprep.subr.bf16.mxu1 %v227_v0  ;;  %v43_v18 = vld [vmem:[%s375_s2 + $0x18] sm:$0xff]  ;;  %v41_v19 = vld [vmem:[%s375_s2 + $0x8] sm:$0xff]  ;;  %v30_v20 = vld [vmem:[%s373_s1 + $0x40] sm:$0xff] }
   0x6   :  { %174 = vmatprep.mubr.msk.f32.mxu0 %vm64_vm0, %v15_v10  ;;  %176 = vmatprep.mubr.msk.f32.mxu1 %vm64_vm0, %v19_v11  ;;  %v31_v21 = vld [vmem:[%s373_s1 + $0x48] sm:$0xff]  ;;  %v32_v23 = vld [vmem:[%s373_s1 + $0x50] sm:$0xff]  ;;  %v33_v24 = vld [vmem:[%s373_s1 + $0x58] sm:$0xff] }
   0x7   :  { %56 = vperm.xlu1 %226, %v42_v15   ;;  %46 = vperm.xlu0 %225, %v40_v16   ;;  %v191_v22 = vpack.c.bf16 %v31_v21, %v30_v20  ;;  %v194_v25 = vpack.c.bf16 %v33_v24, %v32_v23  ;;  %v34_v26 = vld [vmem:[%s373_s1 + $0x60] sm:$0xff]  ;;  %v35_v27 = vld [vmem:[%s373_s1 + $0x68] sm:$0xff]  ;;  %v36_v29 = vld [vmem:[%s373_s1 + $0x70] sm:$0xff] }
   0x8   :  { %183 = vmatpush1.bf16.msra.mxu0 %v182_v7  ;;  %215 = vmatpush1.bf16.msra.mxu1 %v182_v7  ;;  %v197_v28 = vpack.c.bf16 %v35_v27, %v34_v26  ;;  %v37_v30 = vld [vmem:[%s373_s1 + $0x78] sm:$0xff]  ;;  %v38_v32 = vld [vmem:[%s373_s1 + $0x80] sm:$0xff]  ;;  %v39_v33 = vld [vmem:[%s373_s1 + $0x88] sm:$0xff] }
   0x9   :  { %184 = vmatprep.subr.bf16.mxu0 %v227_v0  ;;  %207 = vmatprep.subr.bf16.mxu1 %v227_v0  ;;  %v200_v31 = vpack.c.bf16 %v37_v30, %v36_v29  ;;  %v203_v34 = vpack.c.bf16 %v39_v33, %v38_v32  ;;  %v14_v35 = vld [vmem:[%s374_s0] sm:$0xff]  ;;  %v17_v37 = vld [vmem:[%s374_s0 + $0x18] sm:$0xff]  ;;  %v16_v39 = vld [vmem:[%s374_s0 + $0x10] sm:$0xff] }
   0xa   :  { %v18_v36 = vld [vmem:[%s374_s0 + $0x20] sm:$0xff]  ;;  %v21_v38 = vld [vmem:[%s374_s0 + $0x38] sm:$0xff]  ;;  %v20_v40 = vld [vmem:[%s374_s0 + $0x30] sm:$0xff] }
   0xb   :  { %61 = vperm.xlu1 %226, %v43_v18   ;;  %51 = vperm.xlu0 %225, %v41_v19  }
   0xc   :  { %186 = vmatpush1.bf16.msra.mxu0 %v185_v12  ;;  %216 = vmatpush1.bf16.msra.mxu1 %v185_v12 }
   0xd   :  { %187 = vmatprep.subr.bf16.mxu0 %v227_v0  ;;  %208 = vmatprep.subr.bf16.mxu1 %v227_v0 }
  0x10   :  { %189 = vmatpush1.bf16.msra.mxu0 %v188_v17  ;;  %217 = vmatpush1.bf16.msra.mxu1 %v188_v17 }
  0x11   :  { %190 = vmatprep.subr.bf16.mxu0 %v227_v0  ;;  %209 = vmatprep.subr.bf16.mxu1 %v227_v0 }
  0x14   :  { %192 = vmatpush1.bf16.msra.mxu0 %v191_v22  ;;  %218 = vmatpush1.bf16.msra.mxu1 %v191_v22 }
  0x15   :  { %193 = vmatprep.subr.bf16.mxu0 %v227_v0  ;;  %210 = vmatprep.subr.bf16.mxu1 %v227_v0 }
  0x18   :  { %195 = vmatpush1.bf16.msra.mxu0 %v194_v25  ;;  %219 = vmatpush1.bf16.msra.mxu1 %v194_v25 }
  0x19   :  { %196 = vmatprep.subr.bf16.mxu0 %v227_v0  ;;  %211 = vmatprep.subr.bf16.mxu1 %v227_v0 }
  0x1c   :  { %198 = vmatpush1.bf16.msra.mxu0 %v197_v28  ;;  %220 = vmatpush1.bf16.msra.mxu1 %v197_v28 }
  0x1d   :  { %199 = vmatprep.subr.bf16.mxu0 %v227_v0  ;;  %212 = vmatprep.subr.bf16.mxu1 %v227_v0 }
  0x20   :  { %201 = vmatpush1.bf16.msra.mxu0 %v200_v31  ;;  %221 = vmatpush1.bf16.msra.mxu1 %v200_v31 }
  0x21   :  { %202 = vmatprep.subr.bf16.mxu0 %v227_v0  ;;  %213 = vmatprep.subr.bf16.mxu1 %v227_v0 }
  0x24   :  { %204 = vmatpush1.bf16.msra.mxu0 %v203_v34  ;;  %222 = vmatpush1.bf16.msra.mxu1 %v203_v34 }
  0x27   :  { %142 = vmatmul.mubr.f32.vlgmr.msra.gmra.mrb[0].mxu0 %v14_v35  ;;  %152 = vmatmul.mubr.f32.vlgmr.msra.gmra.mrb[0].mxu1 %v18_v36 }
  0x28   :  { %175 = vmatprep.mubr.msk.f32.mxu0 %vm64_vm0, %v17_v37  ;;  %177 = vmatprep.mubr.msk.f32.mxu1 %vm64_vm0, %v21_v38 }
  0x2b   :  { %147 = vmatmul.mubr.f32.gmra.mrb[2].mxu0 %v16_v39  ;;  %157 = vmatmul.mubr.f32.gmra.mrb[2].mxu1 %v20_v40 }
  0x86   :  { %v57_v41 = vpop.permute.xlu1 %56  ;;  %v47_v42 = vpop.permute.xlu0 %46 }
  0x8a   :  { %v62_v49 = vpop.permute.xlu1 %61  ;;  %v52_v50 = vpop.permute.xlu0 %51 }
  0xfa   :  { %v143_v43 = vpop.f32.mrb[0].mxu0  ;;  %v153_v44 = vpop.f32.mrb[0].mxu1 }
  0xfb   :  { %v144_v45 = vadd.f32 %v143_v43, %v47_v42  ;;  %v154_v46 = vadd.f32 %v153_v44, %v57_v41  ;;  %v145_v47 = vpop.f32.mrb[1].mxu0  ;;  %v155_v48 = vpop.f32.mrb[1].mxu1 }
  0xfd   :  { %v162_v51 = vmax.f32 %v144_v45, 0.0  ;;  %v164_v52 = vmax.f32 %v154_v46, 0.0 }
  0xfe   :  { %v148_v53 = vpop.f32.mrb[2].mxu0  ;;  %v158_v54 = vpop.f32.mrb[2].mxu1 }
  0xff   :  { %166 = vst [vmem:[%s376_s3] sm:$0xff] %v162_v51  ;;  %168 = vst [vmem:[%s376_s3 + $0x10] sm:$0xff] %v164_v52  ;;  %v149_v55 = vadd.f32 %v148_v53, %v52_v50  ;;  %v159_v56 = vadd.f32 %v158_v54, %v62_v49  ;;  %v150_v57 = vpop.f32.mrb[3].mxu0  ;;  %v160_v58 = vpop.f32.mrb[3].mxu1 }
 0x101   :  { %v163_v59 = vmax.f32 %v149_v55, 0.0  ;;  %v165_v60 = vmax.f32 %v159_v56, 0.0 }
 0x103   :  { %167 = vst [vmem:[%s376_s3 + $0x8] sm:$0xff] %v163_v59  ;;  %169 = vst [vmem:[%s376_s3 + $0x18] sm:$0xff] %v165_v60 }

// kernel: discriminator_forward.10
= control target key start
LH: loop header
LB: loop body
LE: loop exit
PB: predicated region body
PF: predicated region fallthrough
CT: control target
= control target key end

     0   :  { %v394_v3 = vmov 0   ;;  %vm86_vm0 = vcmask 261120   ;;  %s591_s1 = inlined_call_operand.vmem [shape: f32[288,32], index: 1, kind: input, shape index: {}]   ;;  %s592_s0 = inlined_call_operand.vmem [shape: f32[32,288], index: 0, kind: input, shape index: {}]   ;;  %s593_s2 = inlined_call_operand.vmem [shape: f32[32,1], index: 2, kind: input, shape index: {}]   ;;  %s594_s3 = inlined_call_operand.vmem [shape: f32[32,32], index: 3, kind: output, shape index: {}]  }
   0x1   :  { %v42_v0 = vld [vmem:[%s591_s1 + $0x80] sm:$0xff]  ;;  %v43_v1 = vld [vmem:[%s591_s1 + $0x88] sm:$0xff]  ;;  %392 = vset.pattern.permute.xlu0 %v394_v3  ;;  %393 = vset.pattern.permute.xlu1 %v394_v3  ;;  %v44_v6 = vld [vmem:[%s591_s1 + $0x90] sm:$0xff] }
   0x2   :  { %v26_v2 = vld [vmem:[%s591_s1] sm:$0xff]  ;;  %v351_v4 = vpack.c.bf16 %v43_v1, %v42_v0  ;;  %v27_v5 = vld [vmem:[%s591_s1 + $0x8] sm:$0xff]  ;;  %v45_v7 = vld [vmem:[%s591_s1 + $0x98] sm:$0xff] }
   0x3   :  { %v353_v8 = vpack.c.bf16 %v27_v5, %v26_v2  ;;  %v355_v9 = vpack.c.bf16 %v45_v7, %v44_v6  ;;  %v28_v10 = vld [vmem:[%s591_s1 + $0x10] sm:$0xff]  ;;  %v29_v11 = vld [vmem:[%s591_s1 + $0x18] sm:$0xff]  ;;  %v46_v12 = vld [vmem:[%s591_s1 + $0xa0] sm:$0xff] }
   0x4   :  { %352 = vmatprep.subr.bf16.mxu0 %v351_v4  ;;  %v47_v13 = vld [vmem:[%s591_s1 + $0xa8] sm:$0xff]  ;;  %v357_v14 = vpack.c.bf16 %v29_v11, %v28_v10  ;;  %v30_v16 = vld [vmem:[%s591_s1 + $0x20] sm:$0xff]  ;;  %v48_v18 = vld [vmem:[%s591_s1 + $0xb0] sm:$0xff] }
   0x5   :  { %354 = vmatpush3.bf16.msra.mxu0 %v353_v8  ;;  %v359_v15 = vpack.c.bf16 %v47_v13, %v46_v12  ;;  %v31_v17 = vld [vmem:[%s591_s1 + $0x28] sm:$0xff]  ;;  %v49_v19 = vld [vmem:[%s591_s1 + $0xb8] sm:$0xff]  ;;  %v32_v22 = vld [vmem:[%s591_s1 + $0x30] sm:$0xff] }
   0x6   :  { %356 = vmatprep.subr.bf16.mxu0 %v355_v9  ;;  %v361_v20 = vpack.c.bf16 %v31_v17, %v30_v16  ;;  %v363_v21 = vpack.c.bf16 %v49_v19, %v48_v18  ;;  %v33_v23 = vld [vmem:[%s591_s1 + $0x38] sm:$0xff]  ;;  %v50_v24 = vld [vmem:[%s591_s1 + $0xc0] sm:$0xff]  ;;  %v51_v25 = vld [vmem:[%s591_s1 + $0xc8] sm:$0xff] }
   0x7   :  { %v58_v26 = vld [vmem:[%s591_s1 + $0x100] sm:$0xff]  ;;  %v59_v27 = vld [vmem:[%s591_s1 + $0x108] sm:$0xff]  ;;  %v365_v30 = vpack.c.bf16 %v33_v23, %v32_v22  ;;  %v60_v31 = vld [vmem:[%s591_s1 + $0x110] sm:$0xff]  ;;  %v367_v33 = vpack.c.bf16 %v51_v25, %v50_v24 }
   0x8   :  { %v383_v28 = vpack.c.bf16 %v59_v27, %v58_v26  ;;  %v15_v29 = vld [vmem:[%s592_s0 + $0x8] sm:$0xff]  ;;  %v61_v32 = vld [vmem:[%s591_s1 + $0x118] sm:$0xff]  ;;  %v34_v34 = vld [vmem:[%s591_s1 + $0x40] sm:$0xff] }
   0x9   :  { %358 = vmatpush3.bf16.msra.mxu0 %v357_v14  ;;  %163 = vmatprep.mubr.f32.mxu0 %v15_v29  ;;  %v35_v35 = vld [vmem:[%s591_s1 + $0x48] sm:$0xff]  ;;  %v387_v36 = vpack.c.bf16 %v61_v32, %v60_v31  ;;  %v16_v37 = vld [vmem:[%s592_s0 + $0x10] sm:$0xff]  ;;  %v53_v39 = vld [vmem:[%s591_s1 + $0xd8] sm:$0xff] }
   0xa   :  { %360 = vmatprep.subr.bf16.mxu0 %v359_v15  ;;  %384 = vmatprep.subr.bf16.mxu1 %v383_v28  ;;  %v52_v38 = vld [vmem:[%s591_s1 + $0xd0] sm:$0xff]  ;;  %v369_v40 = vpack.c.bf16 %v35_v35, %v34_v34  ;;  %v62_v41 = vld [vmem:[%s593_s2] sm:$0xff]  ;;  %v37_v45 = vld [vmem:[%s591_s1 + $0x58] sm:$0xff] }
   0xb   :  { %386 = vmatpush3.bf16.msra.mxu1 %v383_v28  ;;  %345 = vmatprep.mubr.msk.f32.mxu1 %vm86_vm0, %v16_v37  ;;  %v64_v42 = vld [vmem:[%s593_s2 + $0x10] sm:$0xff]  ;;  %v371_v43 = vpack.c.bf16 %v53_v39, %v52_v38  ;;  %v54_v46 = vld [vmem:[%s591_s1 + $0xe0] sm:$0xff]  ;;  %v55_v47 = vld [vmem:[%s591_s1 + $0xe8] sm:$0xff] }
   0xc   :  { %388 = vmatprep.subr.bf16.mxu1 %v387_v36  ;;  %v36_v44 = vld [vmem:[%s591_s1 + $0x50] sm:$0xff]  ;;  %68 = vperm.xlu0 %392, %v62_v41   ;;  %v19_v48 = vld [vmem:[%s592_s0 + $0x28] sm:$0xff]  ;;  %v22_v49 = vld [vmem:[%s592_s0 + $0x40] sm:$0xff]  ;;  %v375_v53 = vpack.c.bf16 %v55_v47, %v54_v46 }
   0xd   :  { %362 = vmatpush3.bf16.msra.mxu0 %v361_v20  ;;  %78 = vperm.xlu1 %393, %v64_v42   ;;  %v63_v50 = vld [vmem:[%s593_s2 + $0x8] sm:$0xff]  ;;  %v373_v51 = vpack.c.bf16 %v37_v45, %v36_v44  ;;  %v65_v52 = vld [vmem:[%s593_s2 + $0x18] sm:$0xff]  ;;  %v38_v54 = vld [vmem:[%s591_s1 + $0x60] sm:$0xff] }
   0xe   :  { %364 = vmatprep.subr.bf16.mxu0 %v363_v21  ;;  %v39_v55 = vld [vmem:[%s591_s1 + $0x68] sm:$0xff]  ;;  %v56_v56 = vld [vmem:[%s591_s1 + $0xf0] sm:$0xff]  ;;  %v57_v57 = vld [vmem:[%s591_s1 + $0xf8] sm:$0xff] }
   0xf   :  { %390 = vmatpush3.bf16.msra.mxu1 %v387_v36  ;;  %v25_v58 = vld [vmem:[%s592_s0 + $0x58] sm:$0xff]  ;;  %v377_v59 = vpack.c.bf16 %v39_v55, %v38_v54  ;;  %v379_v60 = vpack.c.bf16 %v57_v57, %v56_v56  ;;  %v40_v61 = vld [vmem:[%s591_s1 + $0x70] sm:$0xff]  ;;  %v14_v0 = vld [vmem:[%s592_s0] sm:$0xff] }
  0x10   :  { %73 = vperm.xlu0 %392, %v63_v50   ;;  %v41_v62 = vld [vmem:[%s591_s1 + $0x78] sm:$0xff]  ;;  %v18_v1 = vld [vmem:[%s592_s0 + $0x20] sm:$0xff]  ;;  %v20_v4 = vld [vmem:[%s592_s0 + $0x30] sm:$0xff] }
  0x11   :  { %366 = vmatpush3.bf16.msra.mxu0 %v365_v30  ;;  %83 = vperm.xlu1 %393, %v65_v52   ;;  %v381_v63 = vpack.c.bf16 %v41_v62, %v40_v61  ;;  %v17_v2 = vld [vmem:[%s592_s0 + $0x18] sm:$0xff]  ;;  %v24_v5 = vld [vmem:[%s592_s0 + $0x50] sm:$0xff]  ;;  %v23_v6 = vld [vmem:[%s592_s0 + $0x48] sm:$0xff] }
  0x12   :  { %368 = vmatprep.subr.bf16.mxu0 %v367_v33  ;;  %346 = vmatmul.mubr.msk.f32.vlgmr.msra.gmra.mrb[0].mxu1 %vm86_vm0, %v19_v48  ;;  %v21_v3 = vld [vmem:[%s592_s0 + $0x38] sm:$0xff] }
  0x13   :  { %348 = vmatprep.mubr.msk.f32.mxu1 %vm86_vm0, %v22_v49 }
  0x15   :  { %370 = vmatpush3.bf16.msra.mxu0 %v369_v40 }
  0x16   :  { %372 = vmatprep.subr.bf16.mxu0 %v371_v43  ;;  %349 = vmatmul.mubr.msk.f32.gmra.mrb[2].mxu1 %vm86_vm0, %v25_v58 }
  0x19   :  { %374 = vmatpush3.bf16.msra.mxu0 %v373_v51 }
  0x1a   :  { %376 = vmatprep.subr.bf16.mxu0 %v375_v53 }
  0x1d   :  { %378 = vmatpush3.bf16.msra.mxu0 %v377_v59 }
  0x1e   :  { %380 = vmatprep.subr.bf16.mxu0 %v379_v60 }
  0x21   :  { %382 = vmatpush3.bf16.msra.mxu0 %v381_v63 }
  0x24   :  { %164 = vmatmul.mubr.f32.vlgmr.msra.gmra.mrb[0].mxu0 %v14_v0 }
  0x25   :  { %168 = vmatprep.mubr.f32.mxu0 %v18_v1 }
  0x28   :  { %169 = vmatmul.mubr.f32.gmra.mrb[2].mxu0 %v17_v2 }
  0x29   :  { %173 = vmatprep.mubr.f32.mxu0 %v21_v3 }
  0x2c   :  { %174 = vmatmul.mubr.f32.gmra.mrb[4].mxu0 %v20_v4 }
  0x2d   :  { %178 = vmatprep.mubr.f32.mxu0 %v24_v5 }
  0x30   :  { %179 = vmatmul.mubr.f32.gmra.mrb[6].mxu0 %v23_v6 }
  0x8b   :  { %v69_v11 = vpop.permute.xlu0 %68 }
  0x8c   :  { %v79_v24 = vpop.permute.xlu1 %78 }
  0x8f   :  { %v74_v18 = vpop.permute.xlu0 %73 }
  0x90   :  { %v84_v34 = vpop.permute.xlu1 %83 }
  0xe5   :  { %v347_v7 = vpop.f32.mrb[0].mxu1 }
  0xe6   :  { %v250_v8 = vpop.f32.mrb[1].mxu1 }
  0xe9   :  { %v350_v9 = vpop.f32.mrb[2].mxu1 }
  0xea   :  { %v260_v10 = vpop.f32.mrb[3].mxu1 }
  0xf7   :  { %v317_v12 = vpop.f32.mrb[0].mxu0 }
  0xf8   :  { %v318_v13 = vpop.f32.mrb[1].mxu0 }
  0xf9   :  { %v319_v14 = vadd.f32 %v318_v13, %v317_v12 }
  0xfb   :  { %v166_v15 = vadd.f32 %v319_v14, %v69_v11  ;;  %v320_v16 = vpop.f32.mrb[2].mxu0 }
  0xfc   :  { %v321_v17 = vpop.f32.mrb[3].mxu0 }
  0xfd   :  { %v322_v19 = vadd.f32 %v321_v17, %v320_v16  ;;  %v251_v20 = vadd.f32 %v250_v8, %v166_v15 }
  0xff   :  { %v269_v21 = vmax.f32 %v251_v20, 0.0  ;;  %v171_v22 = vadd.f32 %v322_v19, %v74_v18  ;;  %v323_v23 = vpop.f32.mrb[4].mxu0 }
 0x100   :  { %v324_v25 = vpop.f32.mrb[5].mxu0 }
 0x101   :  { %273 = vst.msk [vmem:[%s594_s3] sm:$0xff] %vm86_vm0, %v269_v21  ;;  %v256_v26 = vadd.f32 %v347_v7, %v171_v22  ;;  %v325_v27 = vadd.f32 %v324_v25, %v323_v23 }
 0x103   :  { %v270_v28 = vmax.f32 %v256_v26, 0.0  ;;  %v326_v29 = vpop.f32.mrb[6].mxu0  ;;  %v176_v30 = vadd.f32 %v325_v27, %v79_v24 }
 0x104   :  { %v327_v31 = vpop.f32.mrb[7].mxu0 }
 0x105   :  { %274 = vst.msk [vmem:[%s594_s3 + $0x8] sm:$0xff] %vm86_vm0, %v270_v28  ;;  %v328_v32 = vadd.f32 %v327_v31, %v326_v29  ;;  %v261_v33 = vadd.f32 %v260_v10, %v176_v30 }
 0x107   :  { %v181_v35 = vadd.f32 %v328_v32, %v84_v34  ;;  %v271_v36 = vmax.f32 %v261_v33, 0.0 }
 0x109   :  { %v266_v37 = vadd.f32 %v350_v9, %v181_v35  ;;  %275 = vst.msk [vmem:[%s594_s3 + $0x10] sm:$0xff] %vm86_vm0, %v271_v36 }
 0x10b   :  { %v272_v38 = vmax.f32 %v266_v37, 0.0 }
 0x10d   :  { %276 = vst.msk [vmem:[%s594_s3 + $0x18] sm:$0xff] %vm86_vm0, %v272_v38 }

// kernel: discriminator_forward.11
= control target key start
LH: loop header
LB: loop body
LE: loop exit
PB: predicated region body
PF: predicated region fallthrough
CT: control target
= control target key end

     0   :  { %v653_v47 = vmov 1983009808   ;;  %v105_v49 = vlaneseq  ;;  %vm655_vm0 = vmmov 0   ;;  %vm280_vm2 = vcmask 523264   ;;  %s934_s1 = inlined_call_operand.vmem [shape: f32[512,64], index: 1, kind: input, shape index: {}]   ;;  %s935_s0 = inlined_call_operand.vmem [shape: f32[2,512], index: 0, kind: input, shape index: {}]   ;;  %s936_s3 = inlined_call_operand.vmem [shape: f32[64,16], index: 3, kind: input, shape index: {}]   ;;  %s937_s2 = inlined_call_operand.vmem [shape: f32[1,64], index: 2, kind: input, shape index: {}]   ;;  %s938_s5 = inlined_call_operand.vmem [shape: f32[16,1], index: 5, kind: input, shape index: {}]   ;;  %s939_s6 = inlined_call_operand.<no memory space> [shape: f32[1,1], index: 6, kind: input, shape index: {}]   ;;  %s940_s4 = inlined_call_operand.vmem [shape: f32[1,16], index: 4, kind: input, shape index: {}]   ;;  %s941_s7 = inlined_call_operand.vmem [shape: f32[2,1], index: 7, kind: output, shape index: {}]  }
   0x1   :  { %v45_v0 = vld [vmem:[%s934_s1 + $0x80] sm:$0xff]  ;;  %v46_v1 = vld [vmem:[%s934_s1 + $0x88] sm:$0xff]  ;;  %v47_v11 = vld [vmem:[%s934_s1 + $0x90] sm:$0xff]  ;;  %v103_v48 = vunpack.c.l.s4 %v653_v47  ;;  %v654_v47 = vmov 0.0|0.0   ;;  %vm366_vm4 = vcmask 130048   ;;  %vm446_vm5 = vcmask 1024  }
   0x2   :  { %v29_v2 = vld [vmem:[%s934_s1] sm:$0xff]  ;;  %v565_v3 = vpack.c.bf16 %v46_v1, %v45_v0  ;;  %v30_v4 = vld [vmem:[%s934_s1 + $0x8] sm:$0xff]  ;;  %v48_v13 = vld [vmem:[%s934_s1 + $0x98] sm:$0xff]  ;;  %v106_v0 = vshrl.u32 %v105_v49, 7 }
   0x3   :  { %v77_v5 = vld [vmem:[%s934_s1 + $0x180] sm:$0xff]  ;;  %v78_v6 = vld [vmem:[%s934_s1 + $0x188] sm:$0xff]  ;;  %v567_v7 = vpack.c.bf16 %v30_v4, %v29_v2  ;;  %v31_v14 = vld [vmem:[%s934_s1 + $0x10] sm:$0xff]  ;;  %v569_v16 = vpack.c.bf16 %v48_v13, %v47_v11  ;;  %v104_v63 = vunpack.c.0.s8 %v103_v48 }
   0x4   :  { %v597_v8 = vpack.c.bf16 %v78_v6, %v77_v5  ;;  %v61_v9 = vld [vmem:[%s934_s1 + $0x100] sm:$0xff]  ;;  %v62_v10 = vld [vmem:[%s934_s1 + $0x108] sm:$0xff]  ;;  %566 = vmatprep.subr.bf16.mxu0 %v565_v3  ;;  %v32_v15 = vld [vmem:[%s934_s1 + $0x18] sm:$0xff] }
   0x5   :  { %v599_v12 = vpack.c.bf16 %v62_v10, %v61_v9  ;;  %568 = vmatpush3.bf16.msra.mxu0 %v567_v7  ;;  %v571_v17 = vpack.c.bf16 %v32_v15, %v31_v14  ;;  %v79_v18 = vld [vmem:[%s934_s1 + $0x190] sm:$0xff]  ;;  %v80_v19 = vld [vmem:[%s934_s1 + $0x198] sm:$0xff]  ;;  %v49_v23 = vld [vmem:[%s934_s1 + $0xa0] sm:$0xff]  ;;  %v107_v13 = vsub.s32 %v104_v63, %v106_v0 }
   0x6   :  { %598 = vmatprep.subr.bf16.mxu1 %v597_v8  ;;  %v63_v20 = vld [vmem:[%s934_s1 + $0x110] sm:$0xff]  ;;  %v601_v21 = vpack.c.bf16 %v80_v19, %v79_v18  ;;  %v64_v22 = vld [vmem:[%s934_s1 + $0x118] sm:$0xff]  ;;  %v50_v24 = vld [vmem:[%s934_s1 + $0xa8] sm:$0xff]  ;;  %570 = vmatprep.subr.bf16.mxu0 %v569_v16 }
   0x7   :  { %600 = vmatpush3.bf16.msra.mxu1 %v599_v12  ;;  %v603_v25 = vpack.c.bf16 %v64_v22, %v63_v20  ;;  %v573_v26 = vpack.c.bf16 %v50_v24, %v49_v23  ;;  %v33_v27 = vld [vmem:[%s934_s1 + $0x20] sm:$0xff]  ;;  %v34_v28 = vld [vmem:[%s934_s1 + $0x28] sm:$0xff]  ;;  %v51_v35 = vld [vmem:[%s934_s1 + $0xb0] sm:$0xff] }
   0x8   :  { %v81_v29 = vld [vmem:[%s934_s1 + $0x1a0] sm:$0xff]  ;;  %602 = vmatprep.subr.bf16.mxu1 %v601_v21  ;;  %v82_v30 = vld [vmem:[%s934_s1 + $0x1a8] sm:$0xff]  ;;  %v575_v33 = vpack.c.bf16 %v34_v28, %v33_v27  ;;  %v52_v36 = vld [vmem:[%s934_s1 + $0xb8] sm:$0xff] }
   0x9   :  { %v65_v31 = vld [vmem:[%s934_s1 + $0x120] sm:$0xff]  ;;  %v66_v32 = vld [vmem:[%s934_s1 + $0x128] sm:$0xff]  ;;  %572 = vmatpush3.bf16.msra.mxu0 %v571_v17  ;;  %v605_v34 = vpack.c.bf16 %v82_v30, %v81_v29  ;;  %v35_v37 = vld [vmem:[%s934_s1 + $0x30] sm:$0xff]  ;;  %v577_v39 = vpack.c.bf16 %v52_v36, %v51_v35 }
   0xa   :  { %574 = vmatprep.subr.bf16.mxu0 %v573_v26  ;;  %v607_v38 = vpack.c.bf16 %v66_v32, %v65_v31  ;;  %v36_v40 = vld [vmem:[%s934_s1 + $0x38] sm:$0xff]  ;;  %v83_v41 = vld [vmem:[%s934_s1 + $0x1b0] sm:$0xff]  ;;  %v53_v46 = vld [vmem:[%s934_s1 + $0xc0] sm:$0xff] }
   0xb   :  { %604 = vmatpush3.bf16.msra.mxu1 %v603_v25  ;;  %v84_v42 = vld [vmem:[%s934_s1 + $0x1b8] sm:$0xff]  ;;  %v67_v44 = vld [vmem:[%s934_s1 + $0x130] sm:$0xff]  ;;  %v54_v50 = vld [vmem:[%s934_s1 + $0xc8] sm:$0xff]  ;;  %v579_v51 = vpack.c.bf16 %v36_v40, %v35_v37 }
   0xc   :  { %606 = vmatprep.subr.bf16.mxu1 %v605_v34  ;;  %v609_v43 = vpack.c.bf16 %v84_v42, %v83_v41  ;;  %v68_v45 = vld [vmem:[%s934_s1 + $0x138] sm:$0xff]  ;;  %v85_v52 = vld [vmem:[%s934_s1 + $0x1c0] sm:$0xff]  ;;  %v86_v53 = vld [vmem:[%s934_s1 + $0x1c8] sm:$0xff]  ;;  %v581_v55 = vpack.c.bf16 %v54_v50, %v53_v46 }
   0xd   :  { %576 = vmatpush3.bf16.msra.mxu0 %v575_v33  ;;  %v611_v54 = vpack.c.bf16 %v68_v45, %v67_v44  ;;  %v37_v56 = vld [vmem:[%s934_s1 + $0x40] sm:$0xff]  ;;  %v38_v57 = vld [vmem:[%s934_s1 + $0x48] sm:$0xff]  ;;  %v613_v59 = vpack.c.bf16 %v86_v53, %v85_v52  ;;  %v55_v61 = vld [vmem:[%s934_s1 + $0xd0] sm:$0xff] }
   0xe   :  { %578 = vmatprep.subr.bf16.mxu0 %v577_v39  ;;  %v69_v58 = vld [vmem:[%s934_s1 + $0x140] sm:$0xff]  ;;  %v70_v60 = vld [vmem:[%s934_s1 + $0x148] sm:$0xff]  ;;  %v56_v62 = vld [vmem:[%s934_s1 + $0xd8] sm:$0xff]  ;;  %v583_v3 = vpack.c.bf16 %v38_v57, %v37_v56  ;;  %v656_v57 = vmov 0.0  }
   0xf   :  { %608 = vmatpush3.bf16.msra.mxu1 %v607_v38  ;;  %v87_v1 = vld [vmem:[%s934_s1 + $0x1d0] sm:$0xff]  ;;  %v88_v2 = vld [vmem:[%s934_s1 + $0x1d8] sm:$0xff]  ;;  %v615_v4 = vpack.c.bf16 %v70_v60, %v69_v58  ;;  %v585_v5 = vpack.c.bf16 %v56_v62, %v55_v61  ;;  %v57_v11 = vld [vmem:[%s934_s1 + $0xe0] sm:$0xff] }
  0x10   :  { %610 = vmatprep.subr.bf16.mxu1 %v609_v43  ;;  %v39_v6 = vld [vmem:[%s934_s1 + $0x50] sm:$0xff]  ;;  %v40_v7 = vld [vmem:[%s934_s1 + $0x58] sm:$0xff]  ;;  %v617_v9 = vpack.c.bf16 %v88_v2, %v87_v1  ;;  %v58_v12 = vld [vmem:[%s934_s1 + $0xe8] sm:$0xff] }
  0x11   :  { %580 = vmatpush3.bf16.msra.mxu0 %v579_v51  ;;  %v71_v8 = vld [vmem:[%s934_s1 + $0x150] sm:$0xff]  ;;  %v72_v10 = vld [vmem:[%s934_s1 + $0x158] sm:$0xff]  ;;  %v89_v14 = vld [vmem:[%s934_s1 + $0x1e0] sm:$0xff]  ;;  %v587_v16 = vpack.c.bf16 %v40_v7, %v39_v6  ;;  %v589_v19 = vpack.c.bf16 %v58_v12, %v57_v11 }
  0x12   :  { %582 = vmatprep.subr.bf16.mxu0 %v581_v55  ;;  %v90_v15 = vld [vmem:[%s934_s1 + $0x1e8] sm:$0xff]  ;;  %v41_v17 = vld [vmem:[%s934_s1 + $0x60] sm:$0xff]  ;;  %v619_v18 = vpack.c.bf16 %v72_v10, %v71_v8  ;;  %v59_v25 = vld [vmem:[%s934_s1 + $0xf0] sm:$0xff]  ;;  %v12_v8 = vstv %s939_s6 }
  0x13   :  { %612 = vmatpush3.bf16.msra.mxu1 %v611_v54  ;;  %v42_v20 = vld [vmem:[%s934_s1 + $0x68] sm:$0xff]  ;;  %v73_v21 = vld [vmem:[%s934_s1 + $0x160] sm:$0xff]  ;;  %v621_v23 = vpack.c.bf16 %v90_v15, %v89_v14  ;;  %v60_v26 = vld [vmem:[%s934_s1 + $0xf8] sm:$0xff]  ;;  %13 = vst [vmem:[#allocation2] sm:$0x1] %v12_v8 }
  0x14   :  { %614 = vmatprep.subr.bf16.mxu1 %v613_v59  ;;  %v28_v22 = vld [vmem:[%s935_s0] sm:$0xff]  ;;  %v74_v24 = vld [vmem:[%s934_s1 + $0x168] sm:$0xff]  ;;  %v91_v29 = vld [vmem:[%s934_s1 + $0x1f0] sm:$0xff]  ;;  %v591_v31 = vpack.c.bf16 %v42_v20, %v41_v17  ;;  %v593_v35 = vpack.c.bf16 %v60_v26, %v59_v25 }
  0x15   :  { %584 = vmatpush3.bf16.msra.mxu0 %v583_v3  ;;  %v108_v27 = vrot.slane %v28_v22, %v107_v13  ;;  %v101_v28 = vcombine.high %v28_v22, %v28_v22  ;;  %v92_v30 = vld [vmem:[%s934_s1 + $0x1f8] sm:$0xff]  ;;  %v623_v34 = vpack.c.bf16 %v74_v24, %v73_v21  ;;  %v43_v36 = vld [vmem:[%s934_s1 + $0x70] sm:$0xff]  ;;  %v265_v44 = vld [vmem:[%s936_s3] sm:$0xff] }
  0x16   :  { %586 = vmatprep.subr.bf16.mxu0 %v585_v5  ;;  %v44_v37 = vld [vmem:[%s934_s1 + $0x78] sm:$0xff]  ;;  %v625_v38 = vpack.c.bf16 %v92_v30, %v91_v29  ;;  %v75_v39 = vld [vmem:[%s934_s1 + $0x170] sm:$0xff]  ;;  %v266_v45 = vld [vmem:[%s936_s3 + $0x8] sm:$0xff] }
  0x17   :  { %616 = vmatpush3.bf16.msra.mxu1 %v615_v4  ;;  %v116_v32 = vcombine.high %v108_v27, %v108_v27  ;;  %v115_v33 = vrot.slane %v101_v28, %v107_v13  ;;  %v76_v40 = vld [vmem:[%s934_s1 + $0x178] sm:$0xff]  ;;  %v595_v42 = vpack.c.bf16 %v44_v37, %v43_v36  ;;  %v630_v46 = vpack.c.bf16 %v266_v45, %v265_v44  ;;  %v267_v48 = vld [vmem:[%s936_s3 + $0x10] sm:$0xff]  ;;  %v269_v51 = vld [vmem:[%s936_s3 + $0x20] sm:$0xff] }
  0x18   :  { %618 = vmatprep.subr.bf16.mxu1 %v617_v9  ;;  %v627_v43 = vpack.c.bf16 %v76_v40, %v75_v39  ;;  %v268_v49 = vld [vmem:[%s936_s3 + $0x18] sm:$0xff]  ;;  %v270_v52 = vld [vmem:[%s936_s3 + $0x28] sm:$0xff]  ;;  %v271_v54 = vld [vmem:[%s936_s3 + $0x30] sm:$0xff] }
  0x19   :  { %588 = vmatpush3.bf16.msra.mxu0 %v587_v16  ;;  %186 = vmatprep.mubr.f32.mxu0 %v116_v32  ;;  %v117_v41 = vcombine.high %v115_v33, %v115_v33  ;;  %v633_v50 = vpack.c.bf16 %v268_v49, %v267_v48  ;;  %v636_v53 = vpack.c.bf16 %v270_v52, %v269_v51  ;;  %v272_v55 = vld [vmem:[%s936_s3 + $0x38] sm:$0xff]  ;;  %v452_v59 = vld [vmem:[%s937_s2] ss:$0 sm:$0xff]  ;;  %v358_v6 = vld [vmem:[%s938_s5 + $0x8] sm:$0xff] }
  0x1a   :  { %590 = vmatprep.subr.bf16.mxu0 %v589_v19  ;;  %v639_v56 = vpack.c.bf16 %v272_v55, %v271_v54  ;;  %v357_v5 = vld [vmem:[%s938_s5] sm:$0xff] }
  0x1b   :  { %620 = vmatpush3.bf16.msra.mxu1 %v619_v18  ;;  %256 = vmatprep.mubr.f32.mxu1 %v117_v41  ;;  %v642_v7 = vpack.c.bf16 %v358_v6, %v357_v5  ;;  %v453_v9 = vld [vmem:[%s940_s4] ss:$0 sm:$0xff] }
  0x1c   :  { %622 = vmatprep.subr.bf16.mxu1 %v621_v23  ;;  %v455_v15 = vld [vmem:[#allocation2] ss:$0 sm:$0xff] }
  0x1d   :  { %592 = vmatpush3.bf16.msra.mxu0 %v591_v31 }
  0x1e   :  { %594 = vmatprep.subr.bf16.mxu0 %v593_v35 }
  0x1f   :  { %624 = vmatpush3.bf16.msra.mxu1 %v623_v34 }
  0x20   :  { %626 = vmatprep.subr.bf16.mxu1 %v625_v38 }
  0x21   :  { %596 = vmatpush3.bf16.msra.mxu0 %v595_v42 }
  0x22   :  { %629 = vmatprep.subr.bf16.mxu0 %v654_v47 }
  0x23   :  { %628 = vmatpush3.bf16.msra.mxu1 %v627_v43 }
  0x24   :  { %641 = vmatprep.subr.bf16.mxu1 %v654_v47  ;;  %187 = vmatmul.mubr.f32.vlgmr.msra.gmra.mrb[0].mxu0 %v108_v27 }
  0x25   :  { %631 = vmatpush3.bf16.msra.mxu0 %v630_v46  ;;  %555 = vmatprep.mubr.msk.f32.mxu0 %vm655_vm0, %v656_v57 }
  0x26   :  { %257 = vmatmul.mubr.f32.vlgmr.msra.gmra.mrb[0].mxu1 %v115_v33  ;;  %632 = vmatprep.subr.bf16.mxu0 %v654_v47 }
  0x27   :  { %562 = vmatprep.mubr.msk.f32.mxu1 %vm655_vm0, %v656_v57  ;;  %643 = vmatpush3.bf16.msra.mxu1 %v642_v7 }
  0x29   :  { %634 = vmatpush3.bf16.msra.mxu0 %v633_v50 }
  0x2a   :  { %635 = vmatprep.subr.bf16.mxu0 %v654_v47 }
  0x2d   :  { %637 = vmatpush3.bf16.msra.mxu0 %v636_v53 }
  0x2e   :  { %638 = vmatprep.subr.bf16.mxu0 %v654_v47 }
  0x31   :  { %640 = vmatpush3.bf16.msra.mxu0 %v639_v56 }
  0xf7   :  { %v489_v58 = vpop.f32.mrb[0].mxu0 }
  0xf8   :  { %v490_v60 = vpop.f32.mrb[1].mxu0 }
  0xf9   :  { %v524_v61 = vpop.f32.mrb[0].mxu1  ;;  %v491_v62 = vadd.f32 %v490_v60, %v489_v58 }
  0xfa   :  { %v525_v63 = vpop.f32.mrb[1].mxu1 }
  0xfb   :  { %v526_v0 = vadd.f32 %v525_v63, %v524_v61  ;;  %v189_v1 = vadd.f32 %v491_v62, %v452_v59 }
  0xfd   :  { %v259_v2 = vadd.f32 %v526_v0, %v189_v1 }
  0xff   :  { %vm262_vm1 = vcmp.gt.f32.partialorder %v259_v2, 0.0  ;;  %v263_v3 = vmul.f32 0.2, %v259_v2 }
 0x101   :  { %v264_v4 = vsel %vm262_vm1, %v259_v2, %v263_v3 }
 0x102   :  { %556 = vmatmul.mubr.msk.f32.vlgmr.msra.gmra.mrb[2].mxu0 %vm280_vm2, %v264_v4 }
 0x1d5   :  { %v350_v10 = vpop.f32.mrb[2].mxu0 }
 0x1d6   :  { %v351_v11 = vadd.f32 %v453_v9, %v350_v10  ;;  %v557_v12 = vpop.f32.mrb[3].mxu0 }
 0x1d8   :  { %vm354_vm3 = vcmp.gt.f32.partialorder %v351_v11, 0.0  ;;  %v355_v13 = vmul.f32 0.2, %v351_v11 }
 0x1da   :  { %v356_v14 = vsel %vm354_vm3, %v351_v11, %v355_v13 }
 0x1db   :  { %563 = vmatmul.mubr.msk.f32.vlgmr.msra.gmra.mrb[2].mxu1 %vm366_vm4, %v356_v14 }
 0x2ae   :  { %v436_v16 = vpop.f32.mrb[2].mxu1 }
 0x2af   :  { %v437_v17 = vadd.f32 %v455_v15, %v436_v16  ;;  %v564_v18 = vpop.f32.mrb[3].mxu1 }
 0x2b1   :  { %v440_v19 = vsub.f32 0.0, %v437_v17 }
 0x2b3   :  { %v441_v20 = vmul.f32 1.442695, %v440_v19 }
 0x2b5   :  { %649 = vpow2.f32 %v441_v20 }
 0x2bf   :  { %v650_v21 = vpop.eup %649 }
 0x2c0   :  { %v443_v22 = vadd.f32 1.0, %v650_v21 }
 0x2c2   :  { %651 = vrcp.f32 %v443_v22 }
 0x2cc   :  { %v652_v23 = vpop.eup %651 }
 0x2cd   :  { %447 = vst.msk [vmem:[%s941_s7] sm:$0x3] %vm446_vm5, %v652_v23 }

</bundles_post_ra>
